<compile_context>
chip_gen: v5e
topology: v5e:2x2
jax: 0.10.0
libtpu: 0.0.40
codegen_flags: <defaults>
</compile_context>

<pallas_src>
import functools

import jax
import jax.numpy as jnp
from jax.experimental import pallas as pl
from jax.experimental.pallas import tpu as pltpu

# Module hyper-params: AtomGraph(num_channels=32, num_layers=2, edge_features=4, backbone='egnn')
NUM_CHANNELS = 32
NUM_LAYERS = 2
EDGE_FEATURES = 4
COORD_DIM = 3


def _silu(v):
    return v * jax.nn.sigmoid(v)


def _egnn_kernel(num_layers, e, f,
                 h_ref, x_ref, ea_ref, gmat_ref, ssum_ref, invc_ref,
                 wcc_ref, wrow_ref, out_ref):
    dot = lambda a, b: jnp.dot(a, b, preferred_element_type=jnp.float32)

    gmat = gmat_ref[...]       # [2E, N] stacked one-hot [row; col] (gather via MXU)
    ssum = ssum_ref[...]       # [N, E]  scatter-sum matrix (one_hot(row).T)
    inv_cnt = invc_ref[...]    # [N, 1]  1 / clamp(out-degree, 1)   (segment mean)
    ea = ea_ref[...]           # [E, F]
    wrow = wrow_ref[...]       # [2 + L*(7+F), C] packed row-vector params

    # embedding_in: Linear(C, C)
    h = dot(h_ref[...], wcc_ref[0]) + wrow[0:1]       # [N, C]
    x = x_ref[...]                                    # [N, 3]

    for l in range(num_layers):
        cb = 2 + 7 * l              # base index into packed [C,C] weights
        rb = 2 + (7 + f) * l        # base index into packed row params
        we1_hrow = wcc_ref[cb + 0]
        we1_hcol = wcc_ref[cb + 1]
        we2 = wcc_ref[cb + 2]
        wn1_h = wcc_ref[cb + 3]
        wn1_agg = wcc_ref[cb + 4]
        wn2 = wcc_ref[cb + 5]
        wc1 = wcc_ref[cb + 6]
        w_rad = wrow[rb:rb + 1]                       # we1 row for radial feature
        w_ea = wrow[rb + 1:rb + 1 + f]                # we1 rows for edge_attr
        be1 = wrow[rb + 1 + f:rb + 2 + f]
        be2 = wrow[rb + 2 + f:rb + 3 + f]
        bn1 = wrow[rb + 3 + f:rb + 4 + f]
        bn2 = wrow[rb + 4 + f:rb + 5 + f]
        bc1 = wrow[rb + 5 + f:rb + 6 + f]
        wc2_row = wrow[rb + 6 + f:rb + 7 + f]         # wc2.T, [1, C]

        # Fused gathers: one matmul gives [h[row]; h[col]], one gives [x[row]; x[col]].
        hh = dot(gmat, h)                             # [2E, C]
        xx = dot(gmat, x)                             # [2E, 3]
        h_row, h_col = hh[:e], hh[e:]
        coord_diff = xx[:e] - xx[e:]                  # [E, 3]
        radial = jnp.sum(coord_diff * coord_diff, axis=1, keepdims=True)  # [E, 1]

        # edge_model: concat-free split-weight formulation of
        #   cat([h_row, h_col, radial, edge_attr]) @ we1 + be1
        pre = (dot(h_row, we1_hrow) + dot(h_col, we1_hcol)
               + radial * w_rad + dot(ea, w_ea) + be1)
        m = _silu(pre)
        m = _silu(dot(m, we2) + be2)                  # [E, C]

        # coord_model (coords_agg='mean', no tanh); wc2 applied as lane reduce.
        cvec = _silu(dot(m, wc1) + bc1)
        cmul = jnp.sum(cvec * wc2_row, axis=1, keepdims=True)   # [E, 1] == cvec @ wc2
        x = x + inv_cnt * dot(ssum, coord_diff * cmul)          # segment mean

        # node_model (residual), concat-free: cat([h, agg]) @ wn1 split in two.
        agg = dot(ssum, m)                            # [N, C]
        u = _silu(dot(h, wn1_h) + dot(agg, wn1_agg) + bn1)
        u = dot(u, wn2) + bn2
        h = h + u

    # embedding_out
    out_ref[...] = dot(h, wcc_ref[1]) + wrow[1:2]


def _pack_params(params, c, f, n_layers):
    """Pack 15 weight tensors into two arrays: [2+7L, C, C] and [2+(7+F)L, C]."""
    cc = [params['w_in'], params['w_out']]
    rows = [params['b_in'], params['b_out']]
    for l in range(n_layers):
        we1 = params['we1'][l]            # [2C+1+F, C]  (rows: h_row, h_col, radial, ea)
        wn1 = params['wn1'][l]            # [2C, C]      (rows: h, agg)
        cc += [we1[:c], we1[c:2 * c], params['we2'][l],
               wn1[:c], wn1[c:], params['wn2'][l], params['wc1'][l]]
        rows += [we1[2 * c:2 * c + 1], we1[2 * c + 1:],
                 params['be1'][l], params['be2'][l],
                 params['bn1'][l], params['bn2'][l], params['bc1'][l],
                 params['wc2'][l].T]
    return jnp.stack(cc, axis=0), jnp.concatenate(rows, axis=0)


def atom_graph_forward(h, x, row, col, edge_attr, params):
    """AtomGraph.forward(G_atm, h_atm) for backbone='egnn' (returns updated node features)."""
    n, c = h.shape
    e = row.shape[0]
    f = edge_attr.shape[1]

    # Graph structure as dense matrices (wrapper-side glue; matmuls run on MXU in-kernel).
    grow = jax.nn.one_hot(row, n, dtype=jnp.float32)          # [E, N]
    gcol = jax.nn.one_hot(col, n, dtype=jnp.float32)          # [E, N]
    gmat = jnp.concatenate([grow, gcol], axis=0)              # [2E, N] stacked gather
    ssum = grow.T                                             # [N, E]  segment sum
    inv_cnt = 1.0 / jnp.clip(jnp.sum(ssum, axis=1, keepdims=True), 1.0)  # [N, 1]

    w_cc, w_rows = _pack_params(params, c, f, NUM_LAYERS)

    args = (h, x, edge_attr, gmat, ssum, inv_cnt, w_cc, w_rows)   # 8 inputs total

    kernel = functools.partial(_egnn_kernel, NUM_LAYERS, e, f)
    vmem = pl.BlockSpec(memory_space=pltpu.MemorySpace.VMEM)
    # No grid: single invocation, everything VMEM-resident, no double-buffering machinery.
    return pl.pallas_call(
        kernel,
        out_shape=jax.ShapeDtypeStruct((n, c), jnp.float32),
        in_specs=[vmem] * len(args),
        out_specs=vmem,
    )(*args)


def init_params(key, c, n_layers, f_edge):
    d_e_in = 2 * c + 1 + f_edge
    keys = jax.random.split(key, 15)

    def w(k, shape, scale=0.1):
        return (scale * jax.random.normal(k, shape)).astype(jnp.float32)

    return dict(
        # embedding_in / embedding_out
        w_in=w(keys[0], (c, c)), b_in=w(keys[1], (1, c), 0.01),
        w_out=w(keys[2], (c, c)), b_out=w(keys[3], (1, c), 0.01),
        # per-layer edge_mlp
        we1=w(keys[4], (n_layers, d_e_in, c)), be1=w(keys[5], (n_layers, 1, c), 0.01),
        we2=w(keys[6], (n_layers, c, c)), be2=w(keys[7], (n_layers, 1, c), 0.01),
        # per-layer node_mlp
        wn1=w(keys[8], (n_layers, 2 * c, c)), bn1=w(keys[9], (n_layers, 1, c), 0.01),
        wn2=w(keys[10], (n_layers, c, c)), bn2=w(keys[11], (n_layers, 1, c), 0.01),
        # per-layer coord_mlp (last layer has no bias, xavier gain=0.001 in torch -> tiny scale)
        wc1=w(keys[12], (n_layers, c, c)), bc1=w(keys[13], (n_layers, 1, c), 0.01),
        wc2=w(keys[14], (n_layers, c, 1), 0.001),
    )


def egnn_reference(h, x, row, col, edge_attr, params):
    """Pure-JAX reference (independent gather/segment ops) for validation."""
    n = h.shape[0]
    h = h @ params['w_in'] + params['b_in']
    for l in range(NUM_LAYERS):
        diff = x[row] - x[col]
        radial = jnp.sum(diff * diff, axis=1, keepdims=True)
        e_in = jnp.concatenate([h[row], h[col], radial, edge_attr], axis=1)
        m = jax.nn.silu(e_in @ params['we1'][l] + params['be1'][l])
        m = jax.nn.silu(m @ params['we2'][l] + params['be2'][l])
        cmul = jax.nn.silu(m @ params['wc1'][l] + params['bc1'][l]) @ params['wc2'][l]
        trans = diff * cmul
        ssum = jax.ops.segment_sum(trans, row, num_segments=n)
        cnt = jax.ops.segment_sum(jnp.ones_like(trans), row, num_segments=n)
        x = x + ssum / jnp.clip(cnt, 1.0)
        agg = jax.ops.segment_sum(m, row, num_segments=n)
        n_in = jnp.concatenate([h, agg], axis=1)
        u = jax.nn.silu(n_in @ params['wn1'][l] + params['bn1'][l])
        u = u @ params['wn2'][l] + params['bn2'][l]
        h = h + u
    return h @ params['w_out'] + params['b_out']


if __name__ == "__main__":
    key = jax.random.PRNGKey(0)
    k_h, k_x, k_row, k_col, k_ea, k_p = jax.random.split(key, 6)

    N = 16    # nodes
    E = 48    # edges (multiple of 8 -> sublane-aligned slices of the stacked gather)

    h_atm = jax.random.normal(k_h, (N, NUM_CHANNELS), dtype=jnp.float32)
    x_atm = jax.random.normal(k_x, (N, COORD_DIM), dtype=jnp.float32)           # G_atm.ndata['x'].squeeze(1)
    row = jax.random.randint(k_row, (E,), 0, N, dtype=jnp.int32)                # G_atm.edges()[0]
    col = jax.random.randint(k_col, (E,), 0, N, dtype=jnp.int32)                # G_atm.edges()[1]
    edge_attr = jax.random.normal(k_ea, (E, EDGE_FEATURES), dtype=jnp.float32)  # G_atm.edata['0']

    params = init_params(k_p, NUM_CHANNELS, NUM_LAYERS, EDGE_FEATURES)

    out = atom_graph_forward(h_atm, x_atm, row, col, edge_attr, params)
    out = jax.block_until_ready(out)

    ref = egnn_reference(h_atm, x_atm, row, col, edge_attr, params)
    assert out.shape == (N, NUM_CHANNELS) and out.dtype == jnp.float32
    assert jnp.allclose(out, ref, atol=1e-3, rtol=1e-3), "Pallas kernel mismatch vs JAX reference"

    print("KERNEL_OK")
</pallas_src>

<mosaic_0001>
module attributes {stable_mosaic.version = 11 : i64} {
  func.func @_egnn_kernel(%arg0: memref<16x32xf32, #tpu.memory_space<vmem>>, %arg1: memref<16x3xf32, #tpu.memory_space<vmem>>, %arg2: memref<48x4xf32, #tpu.memory_space<vmem>>, %arg3: memref<96x16xf32, #tpu.memory_space<vmem>>, %arg4: memref<16x48xf32, #tpu.memory_space<vmem>>, %arg5: memref<16x1xf32, #tpu.memory_space<vmem>>, %arg6: memref<16x32x32xf32, #tpu.memory_space<vmem>>, %arg7: memref<24x32xf32, #tpu.memory_space<vmem>>, %arg8: memref<16x32xf32, #tpu.memory_space<vmem>>) attributes {dimension_semantics = [], scalar_prefetch = 0 : i64, scratch_operands = 0 : i64, tpu.core_type = #tpu.core_type<tc>} {
    %c0 = arith.constant 0 : index
    %c0_0 = arith.constant 0 : index
    %0 = vector.load %arg3[%c0, %c0_0] : memref<96x16xf32, #tpu.memory_space<vmem>>, vector<96x16xf32>
    %c0_1 = arith.constant 0 : index
    %c0_2 = arith.constant 0 : index
    %1 = vector.load %arg4[%c0_1, %c0_2] : memref<16x48xf32, #tpu.memory_space<vmem>>, vector<16x48xf32>
    %c0_3 = arith.constant 0 : index
    %c0_4 = arith.constant 0 : index
    %2 = vector.load %arg5[%c0_3, %c0_4] : memref<16x1xf32, #tpu.memory_space<vmem>>, vector<16x1xf32>
    %c0_5 = arith.constant 0 : index
    %c0_6 = arith.constant 0 : index
    %3 = vector.load %arg2[%c0_5, %c0_6] : memref<48x4xf32, #tpu.memory_space<vmem>>, vector<48x4xf32>
    %c0_7 = arith.constant 0 : index
    %c0_8 = arith.constant 0 : index
    %4 = vector.load %arg7[%c0_7, %c0_8] : memref<24x32xf32, #tpu.memory_space<vmem>>, vector<24x32xf32>
    %c0_9 = arith.constant 0 : index
    %c0_10 = arith.constant 0 : index
    %5 = vector.load %arg0[%c0_9, %c0_10] : memref<16x32xf32, #tpu.memory_space<vmem>>, vector<16x32xf32>
    %c0_11 = arith.constant 0 : index
    %c0_12 = arith.constant 0 : index
    %c0_13 = arith.constant 0 : index
    %6 = vector.load %arg6[%c0_11, %c0_12, %c0_13] : memref<16x32x32xf32, #tpu.memory_space<vmem>>, vector<1x32x32xf32>
    %7 = vector.shape_cast %6 : vector<1x32x32xf32> to vector<32x32xf32>
    %cst = arith.constant dense<0.000000e+00> : vector<16x32xf32>
    %8 = tpu.matmul %5, %7, %cst {dimension_numbers = #tpu.dot_dimension_numbers<[1], [0], [0], [1], [0, 0, 1, 1], [], []>} : vector<16x32xf32>, vector<32x32xf32>, vector<16x32xf32> -> vector<16x32xf32>
    %9 = vector.extract_strided_slice %4 {offsets = [0, 0], sizes = [1, 32], strides = [1, 1]} : vector<24x32xf32> to vector<1x32xf32>
    %10 = vector.broadcast %9 : vector<1x32xf32> to vector<16x32xf32>
    %11 = arith.addf %8, %10 : vector<16x32xf32>
    %c0_14 = arith.constant 0 : index
    %c0_15 = arith.constant 0 : index
    %12 = vector.load %arg1[%c0_14, %c0_15] : memref<16x3xf32, #tpu.memory_space<vmem>>, vector<16x3xf32>
    %c2 = arith.constant 2 : index
    %c0_16 = arith.constant 0 : index
    %c0_17 = arith.constant 0 : index
    %13 = vector.load %arg6[%c2, %c0_16, %c0_17] : memref<16x32x32xf32, #tpu.memory_space<vmem>>, vector<1x32x32xf32>
    %14 = vector.shape_cast %13 : vector<1x32x32xf32> to vector<32x32xf32>
    %c3 = arith.constant 3 : index
    %c0_18 = arith.constant 0 : index
    %c0_19 = arith.constant 0 : index
    %15 = vector.load %arg6[%c3, %c0_18, %c0_19] : memref<16x32x32xf32, #tpu.memory_space<vmem>>, vector<1x32x32xf32>
    %16 = vector.shape_cast %15 : vector<1x32x32xf32> to vector<32x32xf32>
    %c4 = arith.constant 4 : index
    %c0_20 = arith.constant 0 : index
    %c0_21 = arith.constant 0 : index
    %17 = vector.load %arg6[%c4, %c0_20, %c0_21] : memref<16x32x32xf32, #tpu.memory_space<vmem>>, vector<1x32x32xf32>
    %18 = vector.shape_cast %17 : vector<1x32x32xf32> to vector<32x32xf32>
    %c5 = arith.constant 5 : index
    %c0_22 = arith.constant 0 : index
    %c0_23 = arith.constant 0 : index
    %19 = vector.load %arg6[%c5, %c0_22, %c0_23] : memref<16x32x32xf32, #tpu.memory_space<vmem>>, vector<1x32x32xf32>
    %20 = vector.shape_cast %19 : vector<1x32x32xf32> to vector<32x32xf32>
    %c6 = arith.constant 6 : index
    %c0_24 = arith.constant 0 : index
    %c0_25 = arith.constant 0 : index
    %21 = vector.load %arg6[%c6, %c0_24, %c0_25] : memref<16x32x32xf32, #tpu.memory_space<vmem>>, vector<1x32x32xf32>
    %22 = vector.shape_cast %21 : vector<1x32x32xf32> to vector<32x32xf32>
    %c7 = arith.constant 7 : index
    %c0_26 = arith.constant 0 : index
    %c0_27 = arith.constant 0 : index
    %23 = vector.load %arg6[%c7, %c0_26, %c0_27] : memref<16x32x32xf32, #tpu.memory_space<vmem>>, vector<1x32x32xf32>
    %24 = vector.shape_cast %23 : vector<1x32x32xf32> to vector<32x32xf32>
    %c8 = arith.constant 8 : index
    %c0_28 = arith.constant 0 : index
    %c0_29 = arith.constant 0 : index
    %25 = vector.load %arg6[%c8, %c0_28, %c0_29] : memref<16x32x32xf32, #tpu.memory_space<vmem>>, vector<1x32x32xf32>
    %26 = vector.shape_cast %25 : vector<1x32x32xf32> to vector<32x32xf32>
    %27 = vector.extract_strided_slice %4 {offsets = [2, 0], sizes = [1, 32], strides = [1, 1]} : vector<24x32xf32> to vector<1x32xf32>
    %28 = vector.extract_strided_slice %4 {offsets = [3, 0], sizes = [4, 32], strides = [1, 1]} : vector<24x32xf32> to vector<4x32xf32>
    %29 = vector.extract_strided_slice %4 {offsets = [7, 0], sizes = [1, 32], strides = [1, 1]} : vector<24x32xf32> to vector<1x32xf32>
    %30 = vector.extract_strided_slice %4 {offsets = [8, 0], sizes = [1, 32], strides = [1, 1]} : vector<24x32xf32> to vector<1x32xf32>
    %31 = vector.extract_strided_slice %4 {offsets = [9, 0], sizes = [1, 32], strides = [1, 1]} : vector<24x32xf32> to vector<1x32xf32>
    %32 = vector.extract_strided_slice %4 {offsets = [10, 0], sizes = [1, 32], strides = [1, 1]} : vector<24x32xf32> to vector<1x32xf32>
    %33 = vector.extract_strided_slice %4 {offsets = [11, 0], sizes = [1, 32], strides = [1, 1]} : vector<24x32xf32> to vector<1x32xf32>
    %34 = vector.extract_strided_slice %4 {offsets = [12, 0], sizes = [1, 32], strides = [1, 1]} : vector<24x32xf32> to vector<1x32xf32>
    %cst_30 = arith.constant dense<0.000000e+00> : vector<96x32xf32>
    %35 = tpu.matmul %0, %11, %cst_30 {dimension_numbers = #tpu.dot_dimension_numbers<[1], [0], [0], [1], [0, 0, 1, 1], [], []>} : vector<96x16xf32>, vector<16x32xf32>, vector<96x32xf32> -> vector<96x32xf32>
    %cst_31 = arith.constant dense<0.000000e+00> : vector<96x3xf32>
    %36 = tpu.matmul %0, %12, %cst_31 {dimension_numbers = #tpu.dot_dimension_numbers<[1], [0], [0], [1], [0, 0, 1, 1], [], []>} : vector<96x16xf32>, vector<16x3xf32>, vector<96x3xf32> -> vector<96x3xf32>
    %37 = vector.extract_strided_slice %35 {offsets = [0, 0], sizes = [48, 32], strides = [1, 1]} : vector<96x32xf32> to vector<48x32xf32>
    %38 = vector.extract_strided_slice %35 {offsets = [48, 0], sizes = [48, 32], strides = [1, 1]} : vector<96x32xf32> to vector<48x32xf32>
    %39 = vector.extract_strided_slice %36 {offsets = [0, 0], sizes = [48, 3], strides = [1, 1]} : vector<96x3xf32> to vector<48x3xf32>
    %40 = vector.extract_strided_slice %36 {offsets = [48, 0], sizes = [48, 3], strides = [1, 1]} : vector<96x3xf32> to vector<48x3xf32>
    %41 = arith.subf %39, %40 : vector<48x3xf32>
    %42 = arith.mulf %41, %41 : vector<48x3xf32>
    %cst_32 = arith.constant dense<0.000000e+00> : vector<48xf32>
    %43 = vector.multi_reduction <add>, %42, %cst_32 [1] : vector<48x3xf32> to vector<48xf32>
    %44 = vector.shape_cast %43 : vector<48xf32> to vector<48x1xf32>
    %cst_33 = arith.constant dense<0.000000e+00> : vector<48x32xf32>
    %45 = tpu.matmul %37, %14, %cst_33 {dimension_numbers = #tpu.dot_dimension_numbers<[1], [0], [0], [1], [0, 0, 1, 1], [], []>} : vector<48x32xf32>, vector<32x32xf32>, vector<48x32xf32> -> vector<48x32xf32>
    %cst_34 = arith.constant dense<0.000000e+00> : vector<48x32xf32>
    %46 = tpu.matmul %38, %16, %cst_34 {dimension_numbers = #tpu.dot_dimension_numbers<[1], [0], [0], [1], [0, 0, 1, 1], [], []>} : vector<48x32xf32>, vector<32x32xf32>, vector<48x32xf32> -> vector<48x32xf32>
    %47 = arith.addf %45, %46 : vector<48x32xf32>
    %48 = vector.broadcast %44 : vector<48x1xf32> to vector<48x32xf32>
    %49 = vector.broadcast %27 : vector<1x32xf32> to vector<48x32xf32>
    %50 = arith.mulf %48, %49 : vector<48x32xf32>
    %51 = arith.addf %47, %50 : vector<48x32xf32>
    %cst_35 = arith.constant dense<0.000000e+00> : vector<48x32xf32>
    %52 = tpu.matmul %3, %28, %cst_35 {dimension_numbers = #tpu.dot_dimension_numbers<[1], [0], [0], [1], [0, 0, 1, 1], [], []>} : vector<48x4xf32>, vector<4x32xf32>, vector<48x32xf32> -> vector<48x32xf32>
    %53 = arith.addf %51, %52 : vector<48x32xf32>
    %54 = vector.broadcast %29 : vector<1x32xf32> to vector<48x32xf32>
    %55 = arith.addf %53, %54 : vector<48x32xf32>
    %56 = arith.negf %55 : vector<48x32xf32>
    %57 = math.exp %56 : vector<48x32xf32>
    %cst_36 = arith.constant 1.000000e+00 : f32
    %58 = vector.broadcast %cst_36 : f32 to vector<48x32xf32>
    %59 = arith.addf %58, %57 : vector<48x32xf32>
    %60 = arith.divf %58, %59 : vector<48x32xf32>
    %61 = arith.mulf %55, %60 : vector<48x32xf32>
    %cst_37 = arith.constant dense<0.000000e+00> : vector<48x32xf32>
    %62 = tpu.matmul %61, %18, %cst_37 {dimension_numbers = #tpu.dot_dimension_numbers<[1], [0], [0], [1], [0, 0, 1, 1], [], []>} : vector<48x32xf32>, vector<32x32xf32>, vector<48x32xf32> -> vector<48x32xf32>
    %63 = vector.broadcast %30 : vector<1x32xf32> to vector<48x32xf32>
    %64 = arith.addf %62, %63 : vector<48x32xf32>
    %65 = arith.negf %64 : vector<48x32xf32>
    %66 = math.exp %65 : vector<48x32xf32>
    %cst_38 = arith.constant 1.000000e+00 : f32
    %67 = vector.broadcast %cst_38 : f32 to vector<48x32xf32>
    %68 = arith.addf %67, %66 : vector<48x32xf32>
    %69 = arith.divf %67, %68 : vector<48x32xf32>
    %70 = arith.mulf %64, %69 : vector<48x32xf32>
    %cst_39 = arith.constant dense<0.000000e+00> : vector<48x32xf32>
    %71 = tpu.matmul %70, %26, %cst_39 {dimension_numbers = #tpu.dot_dimension_numbers<[1], [0], [0], [1], [0, 0, 1, 1], [], []>} : vector<48x32xf32>, vector<32x32xf32>, vector<48x32xf32> -> vector<48x32xf32>
    %72 = vector.broadcast %33 : vector<1x32xf32> to vector<48x32xf32>
    %73 = arith.addf %71, %72 : vector<48x32xf32>
    %74 = arith.negf %73 : vector<48x32xf32>
    %75 = math.exp %74 : vector<48x32xf32>
    %cst_40 = arith.constant 1.000000e+00 : f32
    %76 = vector.broadcast %cst_40 : f32 to vector<48x32xf32>
    %77 = arith.addf %76, %75 : vector<48x32xf32>
    %78 = arith.divf %76, %77 : vector<48x32xf32>
    %79 = arith.mulf %73, %78 : vector<48x32xf32>
    %80 = vector.broadcast %34 : vector<1x32xf32> to vector<48x32xf32>
    %81 = arith.mulf %79, %80 : vector<48x32xf32>
    %cst_41 = arith.constant dense<0.000000e+00> : vector<48xf32>
    %82 = vector.multi_reduction <add>, %81, %cst_41 [1] : vector<48x32xf32> to vector<48xf32>
    %83 = vector.shape_cast %82 : vector<48xf32> to vector<48x1xf32>
    %84 = vector.broadcast %83 : vector<48x1xf32> to vector<48x3xf32>
    %85 = arith.mulf %41, %84 : vector<48x3xf32>
    %cst_42 = arith.constant dense<0.000000e+00> : vector<16x3xf32>
    %86 = tpu.matmul %1, %85, %cst_42 {dimension_numbers = #tpu.dot_dimension_numbers<[1], [0], [0], [1], [0, 0, 1, 1], [], []>} : vector<16x48xf32>, vector<48x3xf32>, vector<16x3xf32> -> vector<16x3xf32>
    %87 = vector.broadcast %2 : vector<16x1xf32> to vector<16x3xf32>
    %88 = arith.mulf %87, %86 : vector<16x3xf32>
    %89 = arith.addf %12, %88 : vector<16x3xf32>
    %cst_43 = arith.constant dense<0.000000e+00> : vector<16x32xf32>
    %90 = tpu.matmul %1, %70, %cst_43 {dimension_numbers = #tpu.dot_dimension_numbers<[1], [0], [0], [1], [0, 0, 1, 1], [], []>} : vector<16x48xf32>, vector<48x32xf32>, vector<16x32xf32> -> vector<16x32xf32>
    %cst_44 = arith.constant dense<0.000000e+00> : vector<16x32xf32>
    %91 = tpu.matmul %11, %20, %cst_44 {dimension_numbers = #tpu.dot_dimension_numbers<[1], [0], [0], [1], [0, 0, 1, 1], [], []>} : vector<16x32xf32>, vector<32x32xf32>, vector<16x32xf32> -> vector<16x32xf32>
    %cst_45 = arith.constant dense<0.000000e+00> : vector<16x32xf32>
    %92 = tpu.matmul %90, %22, %cst_45 {dimension_numbers = #tpu.dot_dimension_numbers<[1], [0], [0], [1], [0, 0, 1, 1], [], []>} : vector<16x32xf32>, vector<32x32xf32>, vector<16x32xf32> -> vector<16x32xf32>
    %93 = arith.addf %91, %92 : vector<16x32xf32>
    %94 = vector.broadcast %31 : vector<1x32xf32> to vector<16x32xf32>
    %95 = arith.addf %93, %94 : vector<16x32xf32>
    %96 = arith.negf %95 : vector<16x32xf32>
    %97 = math.exp %96 : vector<16x32xf32>
    %cst_46 = arith.constant 1.000000e+00 : f32
    %98 = vector.broadcast %cst_46 : f32 to vector<16x32xf32>
    %99 = arith.addf %98, %97 : vector<16x32xf32>
    %100 = arith.divf %98, %99 : vector<16x32xf32>
    %101 = arith.mulf %95, %100 : vector<16x32xf32>
    %cst_47 = arith.constant dense<0.000000e+00> : vector<16x32xf32>
    %102 = tpu.matmul %101, %24, %cst_47 {dimension_numbers = #tpu.dot_dimension_numbers<[1], [0], [0], [1], [0, 0, 1, 1], [], []>} : vector<16x32xf32>, vector<32x32xf32>, vector<16x32xf32> -> vector<16x32xf32>
    %103 = vector.broadcast %32 : vector<1x32xf32> to vector<16x32xf32>
    %104 = arith.addf %102, %103 : vector<16x32xf32>
    %105 = arith.addf %11, %104 : vector<16x32xf32>
    %c9 = arith.constant 9 : index
    %c0_48 = arith.constant 0 : index
    %c0_49 = arith.constant 0 : index
    %106 = vector.load %arg6[%c9, %c0_48, %c0_49] : memref<16x32x32xf32, #tpu.memory_space<vmem>>, vector<1x32x32xf32>
    %107 = vector.shape_cast %106 : vector<1x32x32xf32> to vector<32x32xf32>
    %c10 = arith.constant 10 : index
    %c0_50 = arith.constant 0 : index
    %c0_51 = arith.constant 0 : index
    %108 = vector.load %arg6[%c10, %c0_50, %c0_51] : memref<16x32x32xf32, #tpu.memory_space<vmem>>, vector<1x32x32xf32>
    %109 = vector.shape_cast %108 : vector<1x32x32xf32> to vector<32x32xf32>
    %c11 = arith.constant 11 : index
    %c0_52 = arith.constant 0 : index
    %c0_53 = arith.constant 0 : index
    %110 = vector.load %arg6[%c11, %c0_52, %c0_53] : memref<16x32x32xf32, #tpu.memory_space<vmem>>, vector<1x32x32xf32>
    %111 = vector.shape_cast %110 : vector<1x32x32xf32> to vector<32x32xf32>
    %c12 = arith.constant 12 : index
    %c0_54 = arith.constant 0 : index
    %c0_55 = arith.constant 0 : index
    %112 = vector.load %arg6[%c12, %c0_54, %c0_55] : memref<16x32x32xf32, #tpu.memory_space<vmem>>, vector<1x32x32xf32>
    %113 = vector.shape_cast %112 : vector<1x32x32xf32> to vector<32x32xf32>
    %c13 = arith.constant 13 : index
    %c0_56 = arith.constant 0 : index
    %c0_57 = arith.constant 0 : index
    %114 = vector.load %arg6[%c13, %c0_56, %c0_57] : memref<16x32x32xf32, #tpu.memory_space<vmem>>, vector<1x32x32xf32>
    %115 = vector.shape_cast %114 : vector<1x32x32xf32> to vector<32x32xf32>
    %c14 = arith.constant 14 : index
    %c0_58 = arith.constant 0 : index
    %c0_59 = arith.constant 0 : index
    %116 = vector.load %arg6[%c14, %c0_58, %c0_59] : memref<16x32x32xf32, #tpu.memory_space<vmem>>, vector<1x32x32xf32>
    %117 = vector.shape_cast %116 : vector<1x32x32xf32> to vector<32x32xf32>
    %118 = vector.extract_strided_slice %4 {offsets = [13, 0], sizes = [1, 32], strides = [1, 1]} : vector<24x32xf32> to vector<1x32xf32>
    %119 = vector.extract_strided_slice %4 {offsets = [14, 0], sizes = [4, 32], strides = [1, 1]} : vector<24x32xf32> to vector<4x32xf32>
    %120 = vector.extract_strided_slice %4 {offsets = [18, 0], sizes = [1, 32], strides = [1, 1]} : vector<24x32xf32> to vector<1x32xf32>
    %121 = vector.extract_strided_slice %4 {offsets = [19, 0], sizes = [1, 32], strides = [1, 1]} : vector<24x32xf32> to vector<1x32xf32>
    %122 = vector.extract_strided_slice %4 {offsets = [20, 0], sizes = [1, 32], strides = [1, 1]} : vector<24x32xf32> to vector<1x32xf32>
    %123 = vector.extract_strided_slice %4 {offsets = [21, 0], sizes = [1, 32], strides = [1, 1]} : vector<24x32xf32> to vector<1x32xf32>
    %cst_60 = arith.constant dense<0.000000e+00> : vector<96x32xf32>
    %124 = tpu.matmul %0, %105, %cst_60 {dimension_numbers = #tpu.dot_dimension_numbers<[1], [0], [0], [1], [0, 0, 1, 1], [], []>} : vector<96x16xf32>, vector<16x32xf32>, vector<96x32xf32> -> vector<96x32xf32>
    %cst_61 = arith.constant dense<0.000000e+00> : vector<96x3xf32>
    %125 = tpu.matmul %0, %89, %cst_61 {dimension_numbers = #tpu.dot_dimension_numbers<[1], [0], [0], [1], [0, 0, 1, 1], [], []>} : vector<96x16xf32>, vector<16x3xf32>, vector<96x3xf32> -> vector<96x3xf32>
    %126 = vector.extract_strided_slice %124 {offsets = [0, 0], sizes = [48, 32], strides = [1, 1]} : vector<96x32xf32> to vector<48x32xf32>
    %127 = vector.extract_strided_slice %124 {offsets = [48, 0], sizes = [48, 32], strides = [1, 1]} : vector<96x32xf32> to vector<48x32xf32>
    %128 = vector.extract_strided_slice %125 {offsets = [0, 0], sizes = [48, 3], strides = [1, 1]} : vector<96x3xf32> to vector<48x3xf32>
    %129 = vector.extract_strided_slice %125 {offsets = [48, 0], sizes = [48, 3], strides = [1, 1]} : vector<96x3xf32> to vector<48x3xf32>
    %130 = arith.subf %128, %129 : vector<48x3xf32>
    %131 = arith.mulf %130, %130 : vector<48x3xf32>
    %cst_62 = arith.constant dense<0.000000e+00> : vector<48xf32>
    %132 = vector.multi_reduction <add>, %131, %cst_62 [1] : vector<48x3xf32> to vector<48xf32>
    %133 = vector.shape_cast %132 : vector<48xf32> to vector<48x1xf32>
    %cst_63 = arith.constant dense<0.000000e+00> : vector<48x32xf32>
    %134 = tpu.matmul %126, %107, %cst_63 {dimension_numbers = #tpu.dot_dimension_numbers<[1], [0], [0], [1], [0, 0, 1, 1], [], []>} : vector<48x32xf32>, vector<32x32xf32>, vector<48x32xf32> -> vector<48x32xf32>
    %cst_64 = arith.constant dense<0.000000e+00> : vector<48x32xf32>
    %135 = tpu.matmul %127, %109, %cst_64 {dimension_numbers = #tpu.dot_dimension_numbers<[1], [0], [0], [1], [0, 0, 1, 1], [], []>} : vector<48x32xf32>, vector<32x32xf32>, vector<48x32xf32> -> vector<48x32xf32>
    %136 = arith.addf %134, %135 : vector<48x32xf32>
    %137 = vector.broadcast %133 : vector<48x1xf32> to vector<48x32xf32>
    %138 = vector.broadcast %118 : vector<1x32xf32> to vector<48x32xf32>
    %139 = arith.mulf %137, %138 : vector<48x32xf32>
    %140 = arith.addf %136, %139 : vector<48x32xf32>
    %cst_65 = arith.constant dense<0.000000e+00> : vector<48x32xf32>
    %141 = tpu.matmul %3, %119, %cst_65 {dimension_numbers = #tpu.dot_dimension_numbers<[1], [0], [0], [1], [0, 0, 1, 1], [], []>} : vector<48x4xf32>, vector<4x32xf32>, vector<48x32xf32> -> vector<48x32xf32>
    %142 = arith.addf %140, %141 : vector<48x32xf32>
    %143 = vector.broadcast %120 : vector<1x32xf32> to vector<48x32xf32>
    %144 = arith.addf %142, %143 : vector<48x32xf32>
    %145 = arith.negf %144 : vector<48x32xf32>
    %146 = math.exp %145 : vector<48x32xf32>
    %cst_66 = arith.constant 1.000000e+00 : f32
    %147 = vector.broadcast %cst_66 : f32 to vector<48x32xf32>
    %148 = arith.addf %147, %146 : vector<48x32xf32>
    %149 = arith.divf %147, %148 : vector<48x32xf32>
    %150 = arith.mulf %144, %149 : vector<48x32xf32>
    %cst_67 = arith.constant dense<0.000000e+00> : vector<48x32xf32>
    %151 = tpu.matmul %150, %111, %cst_67 {dimension_numbers = #tpu.dot_dimension_numbers<[1], [0], [0], [1], [0, 0, 1, 1], [], []>} : vector<48x32xf32>, vector<32x32xf32>, vector<48x32xf32> -> vector<48x32xf32>
    %152 = vector.broadcast %121 : vector<1x32xf32> to vector<48x32xf32>
    %153 = arith.addf %151, %152 : vector<48x32xf32>
    %154 = arith.negf %153 : vector<48x32xf32>
    %155 = math.exp %154 : vector<48x32xf32>
    %cst_68 = arith.constant 1.000000e+00 : f32
    %156 = vector.broadcast %cst_68 : f32 to vector<48x32xf32>
    %157 = arith.addf %156, %155 : vector<48x32xf32>
    %158 = arith.divf %156, %157 : vector<48x32xf32>
    %159 = arith.mulf %153, %158 : vector<48x32xf32>
    %cst_69 = arith.constant dense<0.000000e+00> : vector<16x32xf32>
    %160 = tpu.matmul %1, %159, %cst_69 {dimension_numbers = #tpu.dot_dimension_numbers<[1], [0], [0], [1], [0, 0, 1, 1], [], []>} : vector<16x48xf32>, vector<48x32xf32>, vector<16x32xf32> -> vector<16x32xf32>
    %cst_70 = arith.constant dense<0.000000e+00> : vector<16x32xf32>
    %161 = tpu.matmul %105, %113, %cst_70 {dimension_numbers = #tpu.dot_dimension_numbers<[1], [0], [0], [1], [0, 0, 1, 1], [], []>} : vector<16x32xf32>, vector<32x32xf32>, vector<16x32xf32> -> vector<16x32xf32>
    %cst_71 = arith.constant dense<0.000000e+00> : vector<16x32xf32>
    %162 = tpu.matmul %160, %115, %cst_71 {dimension_numbers = #tpu.dot_dimension_numbers<[1], [0], [0], [1], [0, 0, 1, 1], [], []>} : vector<16x32xf32>, vector<32x32xf32>, vector<16x32xf32> -> vector<16x32xf32>
    %163 = arith.addf %161, %162 : vector<16x32xf32>
    %164 = vector.broadcast %122 : vector<1x32xf32> to vector<16x32xf32>
    %165 = arith.addf %163, %164 : vector<16x32xf32>
    %166 = arith.negf %165 : vector<16x32xf32>
    %167 = math.exp %166 : vector<16x32xf32>
    %cst_72 = arith.constant 1.000000e+00 : f32
    %168 = vector.broadcast %cst_72 : f32 to vector<16x32xf32>
    %169 = arith.addf %168, %167 : vector<16x32xf32>
    %170 = arith.divf %168, %169 : vector<16x32xf32>
    %171 = arith.mulf %165, %170 : vector<16x32xf32>
    %cst_73 = arith.constant dense<0.000000e+00> : vector<16x32xf32>
    %172 = tpu.matmul %171, %117, %cst_73 {dimension_numbers = #tpu.dot_dimension_numbers<[1], [0], [0], [1], [0, 0, 1, 1], [], []>} : vector<16x32xf32>, vector<32x32xf32>, vector<16x32xf32> -> vector<16x32xf32>
    %173 = vector.broadcast %123 : vector<1x32xf32> to vector<16x32xf32>
    %174 = arith.addf %172, %173 : vector<16x32xf32>
    %175 = arith.addf %105, %174 : vector<16x32xf32>
    %c1 = arith.constant 1 : index
    %c0_74 = arith.constant 0 : index
    %c0_75 = arith.constant 0 : index
    %176 = vector.load %arg6[%c1, %c0_74, %c0_75] : memref<16x32x32xf32, #tpu.memory_space<vmem>>, vector<1x32x32xf32>
    %177 = vector.shape_cast %176 : vector<1x32x32xf32> to vector<32x32xf32>
    %cst_76 = arith.constant dense<0.000000e+00> : vector<16x32xf32>
    %178 = tpu.matmul %175, %177, %cst_76 {dimension_numbers = #tpu.dot_dimension_numbers<[1], [0], [0], [1], [0, 0, 1, 1], [], []>} : vector<16x32xf32>, vector<32x32xf32>, vector<16x32xf32> -> vector<16x32xf32>
    %179 = vector.extract_strided_slice %4 {offsets = [1, 0], sizes = [1, 32], strides = [1, 1]} : vector<24x32xf32> to vector<1x32xf32>
    %180 = vector.broadcast %179 : vector<1x32xf32> to vector<16x32xf32>
    %181 = arith.addf %178, %180 : vector<16x32xf32>
    %c0_77 = arith.constant 0 : index
    %c0_78 = arith.constant 0 : index
    %182 = vector.load %arg8[%c0_77, %c0_78] : memref<16x32xf32, #tpu.memory_space<vmem>>, vector<16x32xf32>
    tpu.vector_store %arg8[%c0_77, %c0_78], %181 {strides = array<i32>} : memref<16x32xf32, #tpu.memory_space<vmem>>, vector<16x32xf32>,
    return
  }
}

</mosaic_0001>

<bundles_post_ra>
// kernel: tpu_custom_call.1
= control target key start
LH: loop header
LB: loop body
LE: loop exit
PB: predicated region body
PF: predicated region fallthrough
CT: control target
= control target key end

     0   :  { %13 = vsyncpa [#allocation3], 0  ;;  %s3274_s0 = inlined_call_operand.vmem [shape: f32[16,32], index: 0, kind: input, shape index: {}]   ;;  %s3275_s1 = inlined_call_operand.vmem [shape: f32[16,3], index: 1, kind: input, shape index: {}]   ;;  %s3276_s2 = inlined_call_operand.vmem [shape: f32[48,4], index: 2, kind: input, shape index: {}]   ;;  %s3277_s3 = inlined_call_operand.vmem [shape: f32[96,16], index: 3, kind: input, shape index: {}]   ;;  %s3278_s4 = inlined_call_operand.vmem [shape: f32[16,48], index: 4, kind: input, shape index: {}]   ;;  %s3279_s5 = inlined_call_operand.vmem [shape: f32[16,1], index: 5, kind: input, shape index: {}]   ;;  %s3280_s6 = inlined_call_operand.hbm [shape: f32[16,32,32], index: 6, kind: input, shape index: {}]   ;;  %s3281_s7 = inlined_call_operand.vmem [shape: f32[24,32], index: 7, kind: input, shape index: {}]   ;;  %s3282_s8 = inlined_call_operand.hbm [shape: f32[16,32], index: 8, kind: output, shape index: {}]  }
   0x1   :  { %14 = vsyncpa [#allocation4], 0  ;;  %s31_s29 = sshll.u32 %s3280_s6, 4  ;;  %s2443_s30 = smov [#allocation2]   ;;  %s32_s29 = int_to_ptr.hbm [resolvable:$true] %s31_s29 }
   0x2   :  { %s33_s9 = sshll.u32 %s2443_s30, 4  ;;  %s2444_s10 = smov 128   ;;  %s34_s9 = int_to_ptr.vmem [resolvable:$true] %s33_s9 }
   0x3   :  { %s2445_s11 = smov 8  }
   0x4   :  { %39 = dma.hbm_to_vmem [thread:$0]  %s32_s29, 8192, %s34_s9, [#allocation3], %s2444_s10, %s2444_s10, %s2445_s11  }
   0x5   :  { %2439 = dma.done.wait [#allocation3], 8192  }
   0x6   :  { %2440 = vsyncadd [#allocation3], 4294959104  ;;  %v76_v0 = vld [vmem:[#allocation2 + $0x18] sm:$0xff]  ;;  %v75_v1 = vld [vmem:[#allocation2 + $0x10] sm:$0xff]  ;;  %vm78_vm0 = vcmask 261120   ;;  %vm145_vm1 = vcmask 130048  }
   0x7   :  { %97 = vmatpush.msra.mxu0 %v76_v0  ;;  %v74_v2 = vld [vmem:[#allocation2 + $0x8] sm:$0xff]  ;;  %v73_v3 = vld [vmem:[#allocation2] sm:$0xff]  ;;  %v48_v10 = vld [vmem:[%s3277_s3 + $0x10] sm:$0xff]  ;;  %vm300_vm2 = vcmask 23552   ;;  %vm459_vm3 = vcmask 1043456   ;;  %vm440_vm4 = vcmask 31744  }
   0x8   :  { %v71_v4 = vld [vmem:[%s3274_s0] sm:$0xff]  ;;  %v72_v5 = vld [vmem:[%s3274_s0 + $0x8] sm:$0xff]  ;;  %v49_v13 = vld [vmem:[%s3277_s3 + $0x18] sm:$0xff]  ;;  %s2447_s21 = smov [#allocation5]   ;;  %s2043_s24 = sshll.u32 %s3282_s8, 4  ;;  %s2044_s24 = int_to_ptr.hbm [resolvable:$true] %s2043_s24 }
   0x9   :  { %98 = vmatpush.msra.mxu0 %v75_v1  ;;  %v109_v6 = vld [vmem:[%s3275_s1 + $0x8] sm:$0xff]  ;;  %v46_v7 = vld [vmem:[%s3277_s3] sm:$0xff]  ;;  %v52_v20 = vld [vmem:[%s3277_s3 + $0x30] sm:$0xff] }
   0xa   :  { %249 = vmatpush.msra.mxu2 %v109_v6  ;;  %v108_v8 = vld [vmem:[%s3275_s1] sm:$0xff]  ;;  %v47_v9 = vld [vmem:[%s3277_s3 + $0x8] sm:$0xff]  ;;  %v53_v21 = vld [vmem:[%s3277_s3 + $0x38] sm:$0xff] }
   0xb   :  { %99 = vmatpush.msra.mxu0 %v74_v2  ;;  %v2528_v12 = vld [vmem:[%s3281_s7] sm:$0xff]  ;;  %v51_v19 = vld [vmem:[%s3277_s3 + $0x28] sm:$0xff]  ;;  %v56_v24 = vld [vmem:[%s3277_s3 + $0x50] sm:$0xff] }
   0xc   :  { %250 = vmatpush.msra.mxu2 %v108_v8  ;;  %v77_v14 = vperm.slane %v2528_v12, 0  ;;  %v50_v18 = vld [vmem:[%s3277_s3 + $0x20] sm:$0xff]  ;;  %v55_v23 = vld [vmem:[%s3277_s3 + $0x48] sm:$0xff]  ;;  %v57_v25 = vld [vmem:[%s3277_s3 + $0x58] sm:$0xff]  ;;  %v439_v2 = vrot.slane %v2528_v12, 3 }
   0xd   :  { %100 = vmatpush.msra.mxu0 %v73_v3  ;;  %2070 = vmatmul.msk.f32.vlgmr.msra.gmra.mxu2 %vm145_vm1, %v46_v7  ;;  %v54_v22 = vld [vmem:[%s3277_s3 + $0x40] sm:$0xff]  ;;  %v114_v26 = vld [vmem:[#allocation2 + $0x58] sm:$0xff]  ;;  %v113_v27 = vld [vmem:[#allocation2 + $0x50] sm:$0xff] }
   0xe   :  { %2056 = vmatmul.msk.f32.vlgmr.msra.gmra.mxu0 %vm78_vm0, %v71_v4  ;;  %v112_v28 = vld [vmem:[#allocation2 + $0x48] sm:$0xff]  ;;  %v111_v29 = vld [vmem:[#allocation2 + $0x40] sm:$0xff]  ;;  %v119_v37 = vld [vmem:[#allocation2 + $0x78] sm:$0xff] }
   0xf   :  { %402 = vmatpush.msrb.mxu0 %v114_v26  ;;  %v118_v38 = vld [vmem:[#allocation2 + $0x70] sm:$0xff]  ;;  %349 = vmatpush.msra.mxu3 %v119_v37  ;;  %v117_v39 = vld [vmem:[#allocation2 + $0x68] sm:$0xff]  ;;  %v116_v41 = vld [vmem:[#allocation2 + $0x60] sm:$0xff] }
  0x11   :  { %403 = vmatpush.msrb.mxu0 %v113_v27  ;;  %350 = vmatpush.msra.mxu3 %v118_v38  ;;  %v122_v38 = vld [vmem:[#allocation2 + $0x88] sm:$0xff] }
  0x13   :  { %404 = vmatpush.msrb.mxu0 %v112_v28  ;;  %351 = vmatpush.msra.mxu3 %v117_v39 }
  0x15   :  { %2071 = vmatmul.msk.f32.gmra.mxu2 %vm145_vm1, %v47_v9  ;;  %405 = vmatpush.msrb.mxu0 %v111_v29 }
  0x16   :  { %2057 = vmatmul.msk.f32.gmra.mxu0 %vm78_vm0, %v72_v5  ;;  %352 = vmatpush.msra.mxu3 %v116_v41  ;;  %v121_v41 = vld [vmem:[#allocation2 + $0x80] sm:$0xff] }
  0x18   :  { %2094 = vmatpush.msk.msrb.mxu3 %vm459_vm3, %v439_v2 }
  0x1d   :  { %2072 = vmatmul.msk.f32.gmra.mxu2 %vm145_vm1, %v48_v10 }
  0x25   :  { %2073 = vmatmul.msk.f32.gmra.mxu2 %vm145_vm1, %v49_v13 }
  0x2d   :  { %2074 = vmatmul.msk.f32.gmra.mxu2 %vm145_vm1, %v50_v18 }
  0x35   :  { %2075 = vmatmul.msk.f32.gmra.mxu2 %vm145_vm1, %v51_v19 }
  0x3d   :  { %2076 = vmatmul.msk.f32.gmra.mxu2 %vm145_vm1, %v52_v20 }
  0x45   :  { %2077 = vmatmul.msk.f32.gmra.mxu2 %vm145_vm1, %v53_v21 }
  0x4d   :  { %2078 = vmatmul.msk.f32.gmra.mxu2 %vm145_vm1, %v54_v22 }
  0x55   :  { %2079 = vmatmul.msk.f32.gmra.mxu2 %vm145_vm1, %v55_v23 }
  0x5d   :  { %2080 = vmatmul.msk.f32.gmra.mxu2 %vm145_vm1, %v56_v24 }
  0x65   :  { %2081 = vmatmul.msk.f32.gmra.mxu2 %vm145_vm1, %v57_v25 }
  0x8b   :  { %v102_v11 = vpop.f32.mrf.mxu0 }
  0x8c   :  { %v2537_v17 = vadd.f32 %v102_v11, %v77_v14 }
  0x90   :  { %v252_v30 = vpop.f32.mrf.mxu2 }
  0x93   :  { %v105_v15 = vpop.f32.mrf.mxu0 }
  0x94   :  { %v2535_v16 = vadd.f32 %v105_v15, %v77_v14  ;;  %v62_v14 = vld [vmem:[%s3276_s2] sm:$0xff]  ;;  %v63_v15 = vld [vmem:[%s3276_s2 + $0x8] sm:$0xff] }
  0x96   :  { %196 = vmatpush.msra.mxu1 %v2535_v16 }
  0x98   :  { %197 = vmatpush.msra.mxu1 %v2537_v17  ;;  %v255_v31 = vpop.f32.mrf.mxu2 }
  0x99   :  { %2058 = vmatmul.msk.f32.vlgmr.msra.gmra.mxu1 %vm145_vm1, %v46_v7 }
  0xa0   :  { %v258_v32 = vpop.f32.mrf.mxu2 }
  0xa1   :  { %2059 = vmatmul.msk.f32.gmra.mxu1 %vm145_vm1, %v47_v9 }
  0xa8   :  { %v261_v33 = vpop.f32.mrf.mxu2 }
  0xa9   :  { %2060 = vmatmul.msk.f32.gmra.mxu1 %vm145_vm1, %v48_v10 }
  0xb0   :  { %v264_v35 = vpop.f32.mrf.mxu2 }
  0xb1   :  { %2061 = vmatmul.msk.f32.gmra.mxu1 %vm145_vm1, %v49_v13 }
  0xb8   :  { %v267_v40 = vpop.f32.mrf.mxu2 }
  0xb9   :  { %2062 = vmatmul.msk.f32.gmra.mxu1 %vm145_vm1, %v50_v18  ;;  %v64_v18 = vld [vmem:[%s3276_s2 + $0x10] sm:$0xff] }
  0xc0   :  { %v270_v43 = vpop.f32.mrf.mxu2 }
  0xc1   :  { %2063 = vmatmul.msk.f32.gmra.mxu1 %vm145_vm1, %v51_v19  ;;  %v2588_v45 = vsub.f32 %v252_v30, %v270_v43  ;;  %v65_v19 = vld [vmem:[%s3276_s2 + $0x18] sm:$0xff]  ;;  %v2656_v30 = vperm.slane %v2528_v12, 2 }
  0xc3   :  { %v294_v46 = vmul.f32 %v2588_v45, %v2588_v45 }
  0xc5   :  { %v301_v47 = vsel %vm300_vm2, %v294_v46, 0.0 }
  0xc6   :  { %302 = vadd.xlane.f32.xlu0 %v301_v47 }
  0xc8   :  { %v273_v48 = vpop.f32.mrf.mxu2 }
  0xc9   :  { %2064 = vmatmul.msk.f32.gmra.mxu1 %vm145_vm1, %v52_v20  ;;  %v2594_v50 = vsub.f32 %v255_v31, %v273_v48  ;;  %v66_v20 = vld [vmem:[%s3276_s2 + $0x20] sm:$0xff] }
  0xcb   :  { %v295_v51 = vmul.f32 %v2594_v50, %v2594_v50 }
  0xcd   :  { %v304_v52 = vsel %vm300_vm2, %v295_v51, 0.0 }
  0xce   :  { %305 = vadd.xlane.f32.xlu0 %v304_v52 }
  0xd0   :  { %v276_v53 = vpop.f32.mrf.mxu2 }
  0xd1   :  { %2065 = vmatmul.msk.f32.gmra.mxu1 %vm145_vm1, %v53_v21  ;;  %v2600_v55 = vsub.f32 %v258_v32, %v276_v53  ;;  %v67_v21 = vld [vmem:[%s3276_s2 + $0x28] sm:$0xff] }
  0xd3   :  { %v296_v56 = vmul.f32 %v2600_v55, %v2600_v55 }
  0xd5   :  { %v307_v57 = vsel %vm300_vm2, %v296_v56, 0.0 }
  0xd6   :  { %308 = vadd.xlane.f32.xlu1 %v307_v57 }
  0xd8   :  { %v279_v58 = vpop.f32.mrf.mxu2 }
  0xd9   :  { %2066 = vmatmul.msk.f32.gmra.mxu1 %vm145_vm1, %v54_v22  ;;  %v2606_v60 = vsub.f32 %v261_v33, %v279_v58  ;;  %v124_v33 = vld [vmem:[#allocation2 + $0x98] sm:$0xff] }
  0xda   :  { %661 = vmatpush.msra.mxu0 %v124_v33 }
  0xdb   :  { %v297_v61 = vmul.f32 %v2606_v60, %v2606_v60 }
  0xdd   :  { %v310_v62 = vsel %vm300_vm2, %v297_v61, 0.0 }
  0xde   :  { %311 = vadd.xlane.f32.xlu1 %v310_v62 }
  0xe0   :  { %v282_v63 = vpop.f32.mrf.mxu2 }
  0xe1   :  { %2067 = vmatmul.msk.f32.gmra.mxu1 %vm145_vm1, %v55_v23  ;;  %v2612_v1 = vsub.f32 %v264_v35, %v282_v63  ;;  %v123_v35 = vld [vmem:[#allocation2 + $0x90] sm:$0xff] }
  0xe2   :  { %662 = vmatpush.msra.mxu0 %v123_v35 }
  0xe3   :  { %v298_v3 = vmul.f32 %v2612_v1, %v2612_v1 }
  0xe4   :  { %663 = vmatpush.msra.mxu0 %v122_v38 }
  0xe5   :  { %v313_v4 = vsel %vm300_vm2, %v298_v3, 0.0 }
  0xe6   :  { %314 = vadd.xlane.f32.xlu2 %v313_v4  ;;  %664 = vmatpush.msra.mxu0 %v121_v41 }
  0xe8   :  { %v285_v5 = vpop.f32.mrf.mxu2 }
  0xe9   :  { %2068 = vmatmul.msk.f32.gmra.mxu1 %vm145_vm1, %v56_v24  ;;  %v2620_v7 = vsub.f32 %v267_v40, %v285_v5 }
  0xeb   :  { %v299_v8 = vmul.f32 %v2620_v7, %v2620_v7 }
  0xed   :  { %v316_v9 = vsel %vm300_vm2, %v299_v8, 0.0 }
  0xee   :  { %317 = vadd.xlane.f32.xlu2 %v316_v9 }
  0xf1   :  { %2069 = vmatmul.msk.f32.gmra.mxu1 %vm145_vm1, %v57_v25 }
 0x116   :  { %v199_v34 = vpop.f32.mrf.mxu1 }
 0x117   :  { %2088 = vmatmul.msk.f32.vlgmr.msrb.gmra.mxu0 %vm78_vm0, %v199_v34 }
 0x11e   :  { %v202_v36 = vpop.f32.mrf.mxu1 }
 0x11f   :  { %2089 = vmatmul.msk.f32.gmra.mxu0 %vm78_vm0, %v202_v36  ;;  %v2660_v36 = vperm.slane %v2528_v12, 7 }
 0x126   :  { %v205_v42 = vpop.f32.mrf.mxu1 }
 0x127   :  { %2090 = vmatmul.msk.f32.gmra.mxu0 %vm78_vm0, %v205_v42 }
 0x12e   :  { %v208_v44 = vpop.f32.mrf.mxu1 }
 0x12f   :  { %2091 = vmatmul.msk.f32.gmra.mxu0 %vm78_vm0, %v208_v44 }
 0x136   :  { %v211_v49 = vpop.f32.mrf.mxu1 }
 0x137   :  { %2092 = vmatmul.msk.f32.gmra.mxu0 %vm78_vm0, %v211_v49 }
 0x139   :  { %v303_v28 = vpop.xlane.xlu0 %302 }
 0x13a   :  { %v426_v34 = vmul.f32 %v2656_v30, %v303_v28 }
 0x13e   :  { %v214_v54 = vpop.f32.mrf.mxu1 }
 0x13f   :  { %2093 = vmatmul.msk.f32.gmra.mxu0 %vm78_vm0, %v214_v54 }
 0x141   :  { %v306_v42 = vpop.xlane.xlu0 %305 }
 0x142   :  { %v427_v47 = vmul.f32 %v2656_v30, %v306_v42 }
 0x146   :  { %v217_v59 = vpop.f32.mrf.mxu1 }
 0x147   :  { %2082 = vmatmul.msk.f32.vlgmr.msra.gmra.mxu3 %vm78_vm0, %v217_v59 }
 0x149   :  { %v309_v51 = vpop.xlane.xlu1 %308 }
 0x14a   :  { %v428_v58 = vmul.f32 %v2656_v30, %v309_v51 }
 0x14e   :  { %v220_v0 = vpop.f32.mrf.mxu1 }
 0x14f   :  { %2083 = vmatmul.msk.f32.gmra.mxu3 %vm78_vm0, %v220_v0 }
 0x151   :  { %v312_v2 = vpop.xlane.xlu1 %311 }
 0x156   :  { %v223_v6 = vpop.f32.mrf.mxu1 }
 0x157   :  { %2084 = vmatmul.msk.f32.gmra.mxu3 %vm78_vm0, %v223_v6  ;;  %v429_v6 = vmul.f32 %v2656_v30, %v312_v2 }
 0x15e   :  { %v226_v10 = vpop.f32.mrf.mxu1 }
 0x15f   :  { %2085 = vmatmul.msk.f32.gmra.mxu3 %vm78_vm0, %v226_v10 }
 0x166   :  { %v229_v11 = vpop.f32.mrf.mxu1 }
 0x167   :  { %2086 = vmatmul.msk.f32.gmra.mxu3 %vm78_vm0, %v229_v11 }
 0x16e   :  { %v232_v13 = vpop.f32.mrf.mxu1 }
 0x16f   :  { %2087 = vmatmul.msk.f32.gmra.mxu3 %vm78_vm0, %v232_v13  ;;  %v315_v13 = vpop.xlane.xlu2 %314 }
 0x177   :  { %2095 = vmatmul.msk.f32.vlgmr.msrb.gmra.mxu3 %vm440_vm4, %v62_v14  ;;  %v318_v42 = vpop.xlane.xlu2 %317 }
 0x17f   :  { %2096 = vmatmul.msk.f32.gmra.mxu3 %vm440_vm4, %v63_v15 }
 0x187   :  { %2097 = vmatmul.msk.f32.gmra.mxu3 %vm440_vm4, %v64_v18 }
 0x18f   :  { %2098 = vmatmul.msk.f32.gmra.mxu3 %vm440_vm4, %v65_v19 }
 0x194   :  { %v407_v26 = vpop.f32.mrf.mxu0 }
 0x197   :  { %2099 = vmatmul.msk.f32.gmra.mxu3 %vm440_vm4, %v66_v20 }
 0x19c   :  { %v410_v31 = vpop.f32.mrf.mxu0 }
 0x19f   :  { %2100 = vmatmul.msk.f32.gmra.mxu3 %vm440_vm4, %v67_v21 }
 0x1a4   :  { %v413_v43 = vpop.f32.mrf.mxu0 }
 0x1ac   :  { %v416_v57 = vpop.f32.mrf.mxu0 }
 0x1b4   :  { %v419_v11 = vpop.f32.mrf.mxu0 }
 0x1bc   :  { %v422_v41 = vpop.f32.mrf.mxu0 }
 0x1ca   :  { %v354_v22 = vpop.f32.mrf.mxu3 }
 0x1cb   :  { %v408_v32 = vadd.f32 %v407_v26, %v354_v22  ;;  %v430_v26 = vmul.f32 %v2656_v30, %v315_v13  ;;  %v128_v13 = vld [vmem:[#allocation2 + $0xb0] sm:$0xff] }
 0x1cd   :  { %v432_v37 = vadd.f32 %v426_v34, %v408_v32 }
 0x1d2   :  { %v357_v23 = vpop.f32.mrf.mxu3 }
 0x1d3   :  { %v411_v44 = vadd.f32 %v410_v31, %v357_v23 }
 0x1d5   :  { %v433_v49 = vadd.f32 %v427_v47, %v411_v44 }
 0x1da   :  { %v360_v24 = vpop.f32.mrf.mxu3 }
 0x1db   :  { %v414_v53 = vadd.f32 %v413_v43, %v360_v24 }
 0x1dd   :  { %v434_v62 = vadd.f32 %v428_v58, %v414_v53  ;;  %v431_v53 = vmul.f32 %v2656_v30, %v318_v42 }
 0x1e2   :  { %v363_v25 = vpop.f32.mrf.mxu3 }
 0x1e3   :  { %v417_v3 = vadd.f32 %v416_v57, %v363_v25 }
 0x1e5   :  { %v435_v15 = vadd.f32 %v429_v6, %v417_v3 }
 0x1ea   :  { %v366_v27 = vpop.f32.mrf.mxu3 }
 0x1eb   :  { %v420_v21 = vadd.f32 %v419_v11, %v366_v27  ;;  %v129_v11 = vld [vmem:[#allocation2 + $0xb8] sm:$0xff] }
 0x1ec   :  { %1123 = vmatpush.msrb.mxu0 %v129_v11 }
 0x1ed   :  { %v436_v27 = vadd.f32 %v430_v26, %v420_v21 }
 0x1ee   :  { %1124 = vmatpush.msrb.mxu0 %v128_v13 }
 0x1f2   :  { %v2653_v29 = vpop.f32.mrf.mxu3 }
 0x1fa   :  { %v479_v39 = vpop.f32.mrf.mxu3 }
 0x1fb   :  { %v497_v40 = vadd.f32 %v479_v39, %v432_v37 }
 0x1fd   :  { %v504_v46 = vadd.f32 %v2660_v36, %v497_v40 }
 0x1ff   :  { %v2101_v48 = vmul.f32 -1.442695, %v504_v46 }
 0x201   :  { %2231 = vpow2.f32 %v2101_v48  ;;  %v423_v48 = vadd.f32 %v422_v41, %v2653_v29 }
 0x202   :  { %v482_v12 = vpop.f32.mrf.mxu3 }
 0x203   :  { %v498_v52 = vadd.f32 %v482_v12, %v433_v49 }
 0x205   :  { %v2665_v54 = vadd.f32 %v2660_v36, %v498_v52 }
 0x207   :  { %v2232_v56 = vpop.eup %2231  ;;  %v2102_v59 = vmul.f32 -1.442695, %v2665_v54 }
 0x208   :  { %v528_v61 = vadd.f32 1.0, %v2232_v56 }
 0x209   :  { %2233 = vpow2.f32 %v2102_v59 }
 0x20a   :  { %2235 = vrcp.f32 %v528_v61  ;;  %v485_v63 = vpop.f32.mrf.mxu3  ;;  %v545_v22 = vand.u32 2147483648, %v528_v61  ;;  %v543_v24 = vand.u32 2147483647, %v528_v61  ;;  %vm539_vm6 = vweird.f32 %v528_v61 }
 0x20b   :  { %v499_v0 = vadd.f32 %v485_v63, %v434_v62 }
 0x20c   :  { %v546_v34 = vor.u32 1.1754944e-38, %v545_v22  ;;  %vm544_vm8 = vcmp.eq.f32.partialorder %v543_v24, 8.507059e+37 }
 0x20d   :  { %v2670_v4 = vadd.f32 %v2660_v36, %v499_v0 }
 0x20f   :  { %v2234_v5 = vpop.eup %2233  ;;  %v2103_v8 = vmul.f32 -1.442695, %v2670_v4 }
 0x210   :  { %v2236_v9 = vpop.eup %2235  ;;  %v529_v10 = vadd.f32 1.0, %v2234_v5 }
 0x211   :  { %v535_v14 = vmul.f32 %v2236_v9, %v528_v61  ;;  %2237 = vpow2.f32 %v2103_v8  ;;  %vm540_vm5 = vweird.f32 %v2236_v9  ;;  %v437_v61 = vadd.f32 %v431_v53, %v423_v48 }
 0x212   :  { %2239 = vrcp.f32 %v529_v10  ;;  %v488_v18 = vpop.f32.mrf.mxu3  ;;  %vm541_vm7 = vmor %vm539_vm6, %vm540_vm5  ;;  %v560_v49 = vand.u32 2147483648, %v529_v10  ;;  %v558_v52 = vand.u32 2147483647, %v529_v10  ;;  %vm554_vm10 = vweird.f32 %v529_v10 }
 0x213   :  { %v536_v19 = vsub.f32 1.0, %v535_v14  ;;  %v500_v20 = vadd.f32 %v488_v18, %v435_v15 }
 0x214   :  { %v561_v29 = vor.u32 1.1754944e-38, %v560_v49  ;;  %vm559_vm12 = vcmp.eq.f32.partialorder %v558_v52, 8.507059e+37 }
 0x215   :  { %v537_v23 = vmul.f32 %v2236_v9, %v536_v19  ;;  %v2675_v25 = vadd.f32 %v2660_v36, %v500_v20 }
 0x217   :  { %v2238_v28 = vpop.eup %2237  ;;  %v538_v31 = vadd.f32 %v2236_v9, %v537_v23  ;;  %v2104_v32 = vmul.f32 -1.442695, %v2675_v25  ;;  %v126_v23 = vld [vmem:[#allocation2 + $0xa0] sm:$0xff] }
 0x218   :  { %v2240_v33 = vpop.eup %2239  ;;  %v2679_v35 = vadd.f32 1.0, %v2238_v28 }
 0x219   :  { %v542_v37 = vsel %vm541_vm7, %v2236_v9, %v538_v31  ;;  %2241 = vpow2.f32 %v2104_v32  ;;  %v550_v38 = vmul.f32 %v2240_v33, %v529_v10  ;;  %vm555_vm9 = vweird.f32 %v2240_v33 }
 0x21a   :  { %v547_v39 = vsel %vm544_vm8, %v546_v34, %v542_v37  ;;  %2243 = vrcp.f32 %v2679_v35  ;;  %v491_v40 = vpop.f32.mrf.mxu3  ;;  %vm556_vm11 = vmor %vm554_vm10, %vm555_vm9  ;;  %v575_v6 = vand.u32 2147483648, %v2679_v35  ;;  %v573_v10 = vand.u32 2147483647, %v2679_v35 }
 0x21b   :  { %v624_v43 = vmul.f32 %v547_v39, %v504_v46  ;;  %v501_v44 = vadd.f32 %v491_v40, %v436_v27  ;;  %v551_v47 = vsub.f32 1.0, %v550_v38  ;;  %vm569_vm14 = vweird.f32 %v2679_v35 }
 0x21c   :  { %vm574_vm5 = vcmp.eq.f32.partialorder %v573_v10, 8.507059e+37 }
 0x21d   :  { %v2684_v51 = vadd.f32 %v2660_v36, %v501_v44  ;;  %2107 = vmatmul.msk.f32.vlgmr.msra.gmra.mxu0 %vm78_vm0, %v624_v43  ;;  %v552_v12 = vmul.f32 %v2240_v33, %v551_v47 }
 0x21f   :  { %v2242_v56 = vpop.eup %2241  ;;  %v2105_v57 = vmul.f32 -1.442695, %v2684_v51  ;;  %v553_v58 = vadd.f32 %v2240_v33, %v552_v12 }
 0x220   :  { %v2244_v46 = vpop.eup %2243  ;;  %v531_v59 = vadd.f32 1.0, %v2242_v56 }
 0x221   :  { %2245 = vpow2.f32 %v2105_v57  ;;  %v557_v62 = vsel %vm556_vm11, %v2240_v33, %v553_v58  ;;  %v565_v63 = vmul.f32 %v2244_v46, %v2679_v35  ;;  %vm570_vm13 = vweird.f32 %v2244_v46 }
 0x222   :  { %2247 = vrcp.f32 %v531_v59  ;;  %v494_v0 = vpop.f32.mrf.mxu3  ;;  %v562_v2 = vsel %vm559_vm12, %v561_v29, %v557_v62  ;;  %vm571_vm15 = vmor %vm569_vm14, %vm570_vm13  ;;  %v590_v31 = vand.u32 2147483648, %v531_v59  ;;  %v588_v33 = vand.u32 2147483647, %v531_v59 }
 0x223   :  { %v502_v3 = vadd.f32 %v494_v0, %v437_v61  ;;  %v625_v30 = vmul.f32 %v562_v2, %v2665_v54  ;;  %v566_v5 = vsub.f32 1.0, %v565_v63  ;;  %v127_v54 = vld [vmem:[#allocation2 + $0xa8] sm:$0xff]  ;;  %vm584_vm7 = vweird.f32 %v531_v59  ;;  %v144_v2 = vld [vmem:[#allocation2 + $0x118] sm:$0xff] }
 0x224   :  { %1125 = vmatpush.msrb.mxu0 %v127_v54  ;;  %v591_v38 = vor.u32 1.1754944e-38, %v590_v31  ;;  %vm589_vm9 = vcmp.eq.f32.partialorder %v588_v33, 8.507059e+37  ;;  %835 = vmatpush.msrb.mxu1 %v144_v2 }
 0x225   :  { %v2693_v8 = vadd.f32 %v2660_v36, %v502_v3  ;;  %2108 = vmatmul.msk.f32.gmra.mxu0 %vm78_vm0, %v625_v30  ;;  %v567_v9 = vmul.f32 %v2244_v46, %v566_v5  ;;  %v576_v36 = vor.u32 1.1754944e-38, %v575_v6  ;;  %v143_v3 = vld [vmem:[#allocation2 + $0x110] sm:$0xff]  ;;  %v142_v5 = vld [vmem:[#allocation2 + $0x108] sm:$0xff] }
 0x226   :  { %1126 = vmatpush.msrb.mxu0 %v126_v23  ;;  %836 = vmatpush.msrb.mxu1 %v143_v3 }
 0x227   :  { %v2246_v14 = vpop.eup %2245  ;;  %v2106_v15 = vmul.f32 -1.442695, %v2693_v8  ;;  %v568_v18 = vadd.f32 %v2244_v46, %v567_v9 }
 0x228   :  { %v2248_v19 = vpop.eup %2247  ;;  %v532_v20 = vadd.f32 1.0, %v2246_v14  ;;  %837 = vmatpush.msrb.mxu1 %v142_v5 }
 0x229   :  { %2249 = vpow2.f32 %v2106_v15  ;;  %v572_v21 = vsel %vm571_vm15, %v2244_v46, %v568_v18  ;;  %v580_v22 = vmul.f32 %v2248_v19, %v531_v59  ;;  %vm585_vm6 = vweird.f32 %v2248_v19 }
 0x22a   :  { %2251 = vrcp.f32 %v532_v20  ;;  %v577_v24 = vsel %vm574_vm5, %v576_v36, %v572_v21  ;;  %vm586_vm8 = vmor %vm584_vm7, %vm585_vm6  ;;  %v605_v43 = vand.u32 2147483648, %v532_v20  ;;  %v603_v47 = vand.u32 2147483647, %v532_v20 }
 0x22b   :  { %v626_v26 = vmul.f32 %v577_v24, %v2670_v4  ;;  %v581_v28 = vsub.f32 1.0, %v580_v22  ;;  %vm599_vm11 = vweird.f32 %v532_v20 }
 0x22c   :  { %v606_v12 = vor.u32 1.1754944e-38, %v605_v43  ;;  %vm604_vm13 = vcmp.eq.f32.partialorder %v603_v47, 8.507059e+37 }
 0x22d   :  { %2109 = vmatmul.msk.f32.gmra.mxu0 %vm78_vm0, %v626_v26  ;;  %v582_v32 = vmul.f32 %v2248_v19, %v581_v28 }
 0x22f   :  { %v2250_v34 = vpop.eup %2249  ;;  %v583_v35 = vadd.f32 %v2248_v19, %v582_v32 }
 0x230   :  { %v2252_v27 = vpop.eup %2251  ;;  %v533_v37 = vadd.f32 1.0, %v2250_v34 }
 0x231   :  { %v587_v39 = vsel %vm586_vm8, %v2248_v19, %v583_v35  ;;  %v595_v40 = vmul.f32 %v2252_v27, %v532_v20  ;;  %vm600_vm10 = vweird.f32 %v2252_v27 }
 0x232   :  { %2253 = vrcp.f32 %v533_v37  ;;  %v592_v4 = vsel %vm589_vm9, %v591_v38, %v587_v39  ;;  %vm601_vm12 = vmor %vm599_vm11, %vm600_vm10  ;;  %v618_v59 = vand.u32 2147483647, %v533_v37  ;;  %vm614_vm15 = vweird.f32 %v533_v37 }
 0x233   :  { %v627_v41 = vmul.f32 %v592_v4, %v2675_v25  ;;  %v596_v42 = vsub.f32 1.0, %v595_v40  ;;  %v620_v25 = vand.u32 2147483648, %v533_v37 }
 0x234   :  { %vm619_vm6 = vcmp.eq.f32.partialorder %v618_v59, 8.507059e+37 }
 0x235   :  { %2110 = vmatmul.msk.f32.gmra.mxu0 %vm78_vm0, %v627_v41  ;;  %v597_v44 = vmul.f32 %v2252_v27, %v596_v42  ;;  %v621_v29 = vor.u32 1.1754944e-38, %v620_v25 }
 0x237   :  { %v598_v48 = vadd.f32 %v2252_v27, %v597_v44 }
 0x238   :  { %v2254_v49 = vpop.eup %2253 }
 0x239   :  { %v602_v52 = vsel %vm601_vm12, %v2252_v27, %v598_v48  ;;  %v610_v53 = vmul.f32 %v2254_v49, %v533_v37  ;;  %vm615_vm14 = vweird.f32 %v2254_v49 }
 0x23a   :  { %v607_v56 = vsel %vm604_vm13, %v606_v12, %v602_v52  ;;  %vm616_vm5 = vmor %vm614_vm15, %vm615_vm14 }
 0x23b   :  { %v628_v57 = vmul.f32 %v607_v56, %v2684_v51  ;;  %v611_v58 = vsub.f32 1.0, %v610_v53  ;;  %v2714_v51 = vld [vmem:[%s3281_s7 + $0x8] sm:$0xff] }
 0x23c   :  { %v2717_v30 = vperm.slane %v2714_v51, 0 }
 0x23d   :  { %2111 = vmatmul.msk.f32.gmra.mxu0 %vm78_vm0, %v628_v57  ;;  %v612_v46 = vmul.f32 %v2254_v49, %v611_v58 }
 0x23f   :  { %v613_v61 = vadd.f32 %v2254_v49, %v612_v46 }
 0x241   :  { %v617_v62 = vsel %vm616_vm5, %v2254_v49, %v613_v61 }
 0x242   :  { %v622_v63 = vsel %vm619_vm6, %v621_v29, %v617_v62 }
 0x243   :  { %v629_v0 = vmul.f32 %v622_v63, %v2693_v8  ;;  %v141_v8 = vld [vmem:[#allocation2 + $0x100] sm:$0xff] }
 0x244   :  { %838 = vmatpush.msrb.mxu1 %v141_v8 }
 0x245   :  { %2112 = vmatmul.msk.f32.gmra.mxu0 %vm78_vm0, %v629_v0 }
 0x24d   :  { %2137 = vmatmul.msk.f32.vlgmr.msrb.gmra.mxu0 %vm78_vm0, %v2537_v17 }
 0x255   :  { %2138 = vmatmul.msk.f32.gmra.mxu0 %vm78_vm0, %v2535_v16 }
 0x29a   :  { %v666_v6 = vpop.f32.mrf.mxu0 }
 0x29b   :  { %v667_v9 = vadd.f32 %v666_v6, %v2717_v30 }
 0x29d   :  { %v2113_v10 = vmul.f32 -1.442695, %v667_v9 }
 0x29f   :  { %2255 = vpow2.f32 %v2113_v10 }
 0x2a2   :  { %v669_v11 = vpop.f32.mrf.mxu0 }
 0x2a3   :  { %v670_v13 = vadd.f32 %v669_v11, %v2717_v30 }
 0x2a5   :  { %v2256_v14 = vpop.eup %2255  ;;  %v2114_v15 = vmul.f32 -1.442695, %v670_v13 }
 0x2a6   :  { %v702_v18 = vadd.f32 1.0, %v2256_v14 }
 0x2a7   :  { %2257 = vpow2.f32 %v2114_v15 }
 0x2a8   :  { %2259 = vrcp.f32 %v702_v18  ;;  %v719_v26 = vand.u32 2147483648, %v702_v18  ;;  %v717_v32 = vand.u32 2147483647, %v702_v18  ;;  %vm713_vm8 = vweird.f32 %v702_v18 }
 0x2aa   :  { %v672_v54 = vpop.f32.mrf.mxu0  ;;  %v720_v38 = vor.u32 1.1754944e-38, %v719_v26  ;;  %vm718_vm10 = vcmp.eq.f32.partialorder %v717_v32, 8.507059e+37 }
 0x2ab   :  { %v2722_v19 = vadd.f32 %v672_v54, %v2717_v30 }
 0x2ad   :  { %v2258_v20 = vpop.eup %2257  ;;  %v2115_v36 = vmul.f32 -1.442695, %v2722_v19 }
 0x2ae   :  { %v2260_v21 = vpop.eup %2259  ;;  %v703_v22 = vadd.f32 1.0, %v2258_v20 }
 0x2af   :  { %v709_v23 = vmul.f32 %v2260_v21, %v702_v18  ;;  %2261 = vpow2.f32 %v2115_v36  ;;  %vm714_vm7 = vweird.f32 %v2260_v21 }
 0x2b0   :  { %2263 = vrcp.f32 %v703_v22  ;;  %vm715_vm9 = vmor %vm713_vm8, %vm714_vm7  ;;  %v734_v44 = vand.u32 2147483648, %v703_v22  ;;  %v732_v49 = vand.u32 2147483647, %v703_v22  ;;  %vm728_vm12 = vweird.f32 %v703_v22 }
 0x2b1   :  { %v710_v24 = vsub.f32 1.0, %v709_v23 }
 0x2b2   :  { %v675_v28 = vpop.f32.mrf.mxu0  ;;  %v735_v58 = vor.u32 1.1754944e-38, %v734_v44  ;;  %vm733_vm14 = vcmp.eq.f32.partialorder %v732_v49, 8.507059e+37 }
 0x2b3   :  { %v711_v31 = vmul.f32 %v2260_v21, %v710_v24  ;;  %v2726_v33 = vadd.f32 %v675_v28, %v2717_v30 }
 0x2b5   :  { %v2262_v34 = vpop.eup %2261  ;;  %v712_v35 = vadd.f32 %v2260_v21, %v711_v31  ;;  %v2116_v27 = vmul.f32 -1.442695, %v2726_v33 }
 0x2b6   :  { %v2264_v37 = vpop.eup %2263  ;;  %v704_v39 = vadd.f32 1.0, %v2262_v34 }
 0x2b7   :  { %v716_v40 = vsel %vm715_vm9, %v2260_v21, %v712_v35  ;;  %v724_v4 = vmul.f32 %v2264_v37, %v703_v22  ;;  %2265 = vpow2.f32 %v2116_v27  ;;  %vm729_vm11 = vweird.f32 %v2264_v37 }
 0x2b8   :  { %v721_v41 = vsel %vm718_vm10, %v720_v38, %v716_v40  ;;  %2267 = vrcp.f32 %v704_v39  ;;  %vm730_vm13 = vmor %vm728_vm12, %vm729_vm11  ;;  %v749_v63 = vand.u32 2147483648, %v704_v39  ;;  %v747_v3 = vand.u32 2147483647, %v704_v39 }
 0x2b9   :  { %v2729_v42 = vmul.f32 %v721_v41, %v667_v9  ;;  %v725_v43 = vsub.f32 1.0, %v724_v4  ;;  %vm743_vm5 = vweird.f32 %v704_v39 }
 0x2ba   :  { %v678_v47 = vpop.f32.mrf.mxu0  ;;  %v750_v11 = vor.u32 1.1754944e-38, %v749_v63  ;;  %vm748_vm7 = vcmp.eq.f32.partialorder %v747_v3, 8.507059e+37 }
 0x2bb   :  { %v726_v48 = vmul.f32 %v2264_v37, %v725_v43  ;;  %v2732_v12 = vadd.f32 %v678_v47, %v2717_v30  ;;  %2119 = vmatmul.msk.f32.vlgmr.msrb.gmra.mxu1 %vm78_vm0, %v2729_v42 }
 0x2bd   :  { %v2266_v52 = vpop.eup %2265  ;;  %v727_v53 = vadd.f32 %v2264_v37, %v726_v48  ;;  %v2117_v56 = vmul.f32 -1.442695, %v2732_v12 }
 0x2be   :  { %v2268_v57 = vpop.eup %2267  ;;  %v705_v25 = vadd.f32 1.0, %v2266_v52 }
 0x2bf   :  { %v731_v46 = vsel %vm730_vm13, %v2264_v37, %v727_v53  ;;  %v739_v59 = vmul.f32 %v2268_v57, %v704_v39  ;;  %2269 = vpow2.f32 %v2117_v56  ;;  %vm744_vm15 = vweird.f32 %v2268_v57 }
 0x2c0   :  { %v736_v61 = vsel %vm733_vm14, %v735_v58, %v731_v46  ;;  %2271 = vrcp.f32 %v705_v25  ;;  %vm745_vm6 = vmor %vm743_vm5, %vm744_vm15  ;;  %v764_v20 = vand.u32 2147483648, %v705_v25  ;;  %v762_v21 = vand.u32 2147483647, %v705_v25  ;;  %v2765_v46 = vld [vmem:[%s3278_s4 + $0x8] sm:$0xff] }
 0x2c1   :  { %v2737_v29 = vmul.f32 %v736_v61, %v670_v13  ;;  %v740_v62 = vsub.f32 1.0, %v739_v59  ;;  %vm758_vm9 = vweird.f32 %v705_v25  ;;  %v804_v61 = vperm.slane %v2714_v51, 3 }
 0x2c2   :  { %v681_v0 = vpop.f32.mrf.mxu0  ;;  %v765_v26 = vor.u32 1.1754944e-38, %v764_v20  ;;  %vm763_vm11 = vcmp.eq.f32.partialorder %v762_v21, 8.507059e+37  ;;  %v2798_v21 = vld [vmem:[#allocation2 + $0xc0] sm:$0xff] }
 0x2c3   :  { %v741_v2 = vmul.f32 %v2268_v57, %v740_v62  ;;  %v2740_v5 = vadd.f32 %v681_v0, %v2717_v30  ;;  %2120 = vmatmul.msk.f32.gmra.mxu1 %vm78_vm0, %v2737_v29 }
 0x2c5   :  { %v2270_v6 = vpop.eup %2269  ;;  %v742_v8 = vadd.f32 %v2268_v57, %v741_v2  ;;  %v2118_v9 = vmul.f32 -1.442695, %v2740_v5 }
 0x2c6   :  { %v2272_v10 = vpop.eup %2271  ;;  %v706_v13 = vadd.f32 1.0, %v2270_v6 }
 0x2c7   :  { %v746_v14 = vsel %vm745_vm6, %v2268_v57, %v742_v8  ;;  %v754_v15 = vmul.f32 %v2272_v10, %v705_v25  ;;  %2273 = vpow2.f32 %v2118_v9  ;;  %vm759_vm8 = vweird.f32 %v2272_v10 }
 0x2c8   :  { %v751_v18 = vsel %vm748_vm7, %v750_v11, %v746_v14  ;;  %2275 = vrcp.f32 %v706_v13  ;;  %vm760_vm10 = vmor %vm758_vm9, %vm759_vm8  ;;  %v779_v27 = vand.u32 2147483648, %v706_v13  ;;  %v777_v38 = vand.u32 2147483647, %v706_v13 }
 0x2c9   :  { %v800_v30 = vmul.f32 %v751_v18, %v2722_v19  ;;  %v755_v54 = vsub.f32 1.0, %v754_v15  ;;  %vm773_vm13 = vweird.f32 %v706_v13  ;;  %vm1009_vm9 = vcmask 392192   ;;  %v2788_v15 = vld [vmem:[#allocation2 + $0xd0] sm:$0xff] }
 0x2ca   :  { %v780_v4 = vor.u32 1.1754944e-38, %v779_v27  ;;  %vm778_vm15 = vcmp.eq.f32.partialorder %v777_v38, 8.507059e+37 }
 0x2cb   :  { %v756_v36 = vmul.f32 %v2272_v10, %v755_v54  ;;  %2121 = vmatmul.msk.f32.gmra.mxu1 %vm78_vm0, %v800_v30 }
 0x2cd   :  { %v2274_v22 = vpop.eup %2273  ;;  %v757_v23 = vadd.f32 %v2272_v10, %v756_v36 }
 0x2ce   :  { %v2276_v24 = vpop.eup %2275  ;;  %v707_v28 = vadd.f32 1.0, %v2274_v22 }
 0x2cf   :  { %v761_v31 = vsel %vm760_vm10, %v2272_v10, %v757_v23  ;;  %v769_v32 = vmul.f32 %v2276_v24, %v706_v13  ;;  %vm774_vm12 = vweird.f32 %v2276_v24  ;;  %v2785_v13 = vld [vmem:[#allocation2 + $0xd8] sm:$0xff] }
 0x2d0   :  { %v766_v34 = vsel %vm763_vm11, %v765_v26, %v761_v31  ;;  %2277 = vrcp.f32 %v707_v28  ;;  %vm775_vm14 = vmor %vm773_vm13, %vm774_vm12  ;;  %v792_v52 = vand.u32 2147483647, %v707_v28  ;;  %vm788_vm6 = vweird.f32 %v707_v28 }
 0x2d1   :  { %v801_v19 = vmul.f32 %v766_v34, %v2726_v33  ;;  %v770_v35 = vsub.f32 1.0, %v769_v32  ;;  %v794_v33 = vand.u32 2147483648, %v707_v28 }
 0x2d2   :  { %vm793_vm8 = vcmp.eq.f32.partialorder %v792_v52, 8.507059e+37 }
 0x2d3   :  { %v771_v37 = vmul.f32 %v2276_v24, %v770_v35  ;;  %2122 = vmatmul.msk.f32.gmra.mxu1 %vm78_vm0, %v801_v19  ;;  %v795_v56 = vor.u32 1.1754944e-38, %v794_v33 }
 0x2d5   :  { %v772_v39 = vadd.f32 %v2276_v24, %v771_v37 }
 0x2d6   :  { %v2278_v40 = vpop.eup %2277 }
 0x2d7   :  { %v776_v41 = vsel %vm775_vm14, %v2276_v24, %v772_v39  ;;  %v784_v43 = vmul.f32 %v2278_v40, %v707_v28  ;;  %vm789_vm5 = vweird.f32 %v2278_v40 }
 0x2d8   :  { %v781_v44 = vsel %vm778_vm15, %v780_v4, %v776_v41  ;;  %vm790_vm7 = vmor %vm788_vm6, %vm789_vm5 }
 0x2d9   :  { %v802_v47 = vmul.f32 %v781_v44, %v2732_v12  ;;  %v785_v48 = vsub.f32 1.0, %v784_v43  ;;  %v2757_v12 = vld [vmem:[%s3278_s4] sm:$0xff] }
 0x2db   :  { %v786_v49 = vmul.f32 %v2278_v40, %v785_v48  ;;  %2123 = vmatmul.msk.f32.gmra.mxu1 %vm78_vm0, %v802_v47 }
 0x2dd   :  { %v787_v53 = vadd.f32 %v2278_v40, %v786_v49 }
 0x2df   :  { %v791_v57 = vsel %vm790_vm7, %v2278_v40, %v787_v53 }
 0x2e0   :  { %v796_v58 = vsel %vm793_vm8, %v795_v56, %v791_v57 }
 0x2e1   :  { %v803_v25 = vmul.f32 %v796_v58, %v2740_v5 }
 0x2e3   :  { %2124 = vmatmul.msk.f32.gmra.mxu1 %vm78_vm0, %v803_v25  ;;  %1063 = vmatpush.msra.mxu3 %v803_v25 }
 0x2e5   :  { %1064 = vmatpush.msra.mxu3 %v802_v47 }
 0x2e7   :  { %1065 = vmatpush.msra.mxu3 %v801_v19 }
 0x2e9   :  { %1066 = vmatpush.msra.mxu3 %v800_v30  ;;  %v2793_v30 = vld [vmem:[#allocation2 + $0xc8] sm:$0xff] }
 0x2eb   :  { %1067 = vmatpush.msra.mxu3 %v2737_v29 }
 0x2ed   :  { %1068 = vmatpush.msra.mxu3 %v2729_v42 }
 0x2ee   :  { %2133 = vmatmul.msk.f32.vlgmr.msra.gmra.mxu3 %vm1009_vm9, %v2757_v12 }
 0x2ef   :  { %2216 = vmatpush.msrb.mxu3 %v2785_v13 }
 0x2f1   :  { %2217 = vmatpush.msrb.mxu3 %v2788_v15 }
 0x2f3   :  { %2218 = vmatpush.msrb.mxu3 %v2793_v30 }
 0x2f5   :  { %2219 = vmatpush.msrb.mxu3 %v2798_v21 }
 0x2f6   :  { %2134 = vmatmul.msk.f32.gmra.mxu3 %vm1009_vm9, %v2765_v46 }
 0x338   :  { %v840_v59 = vpop.f32.mrf.mxu1 }
 0x339   :  { %v2770_v29 = vadd.f32 %v840_v59, %v804_v61 }
 0x33b   :  { %v2125_v63 = vmul.f32 -1.442695, %v2770_v29 }
 0x33d   :  { %2279 = vpow2.f32 %v2125_v63 }
 0x340   :  { %v843_v62 = vpop.f32.mrf.mxu1 }
 0x341   :  { %v2773_v42 = vadd.f32 %v843_v62, %v804_v61 }
 0x343   :  { %v2126_v2 = vmul.f32 -1.442695, %v2773_v42  ;;  %v2280_v3 = vpop.eup %2279 }
 0x344   :  { %v2776_v5 = vadd.f32 1.0, %v2280_v3 }
 0x345   :  { %2281 = vpow2.f32 %v2126_v2 }
 0x346   :  { %2283 = vrcp.f32 %v2776_v5  ;;  %vm887_vm11 = vweird.f32 %v2776_v5  ;;  %v893_v49 = vand.u32 2147483648, %v2776_v5  ;;  %v891_v57 = vand.u32 2147483647, %v2776_v5 }
 0x348   :  { %v846_v0 = vpop.f32.mrf.mxu1  ;;  %v894_v3 = vor.u32 1.1754944e-38, %v893_v49  ;;  %vm892_vm6 = vcmp.eq.f32.partialorder %v891_v57, 8.507059e+37 }
 0x349   :  { %v2778_v6 = vadd.f32 %v846_v0, %v804_v61 }
 0x34b   :  { %v2127_v10 = vmul.f32 -1.442695, %v2778_v6  ;;  %v2282_v14 = vpop.eup %2281 }
 0x34c   :  { %v2791_v18 = vadd.f32 1.0, %v2282_v14  ;;  %v2284_v54 = vpop.eup %2283 }
 0x34d   :  { %v883_v23 = vmul.f32 %v2284_v54, %v2776_v5  ;;  %vm888_vm10 = vweird.f32 %v2284_v54 }
 0x34e   :  { %vm2821_vm13 = vmor %vm887_vm11, %vm888_vm10  ;;  %vm902_vm10 = vweird.f32 %v2791_v18 }
 0x34f   :  { %v884_v31 = vsub.f32 1.0, %v883_v23 }
 0x350   :  { %v849_v8 = vpop.f32.mrf.mxu1 }
 0x351   :  { %v2780_v9 = vadd.f32 %v849_v8, %v804_v61  ;;  %v885_v37 = vmul.f32 %v2284_v54, %v884_v31 }
 0x353   :  { %v2128_v11 = vmul.f32 -1.442695, %v2780_v9  ;;  %v886_v43 = vadd.f32 %v2284_v54, %v885_v37 }
 0x355   :  { %2285 = vpow2.f32 %v2128_v11  ;;  %v890_v25 = vsel %vm2821_vm13, %v2284_v54, %v886_v43 }
 0x356   :  { %2287 = vpow2.f32 %v2127_v10  ;;  %v895_v11 = vsel %vm892_vm6, %v894_v3, %v890_v25 }
 0x357   :  { %2289 = vrcp.f32 %v2791_v18 }
 0x358   :  { %v852_v20 = vpop.f32.mrf.mxu1 }
 0x359   :  { %v2796_v36 = vadd.f32 %v852_v20, %v804_v61  ;;  %v2837_v20 = vperm.slane %v2714_v51, 4 }
 0x35b   :  { %v2286_v22 = vpop.eup %2285  ;;  %v2129_v24 = vmul.f32 -1.442695, %v2796_v36 }
 0x35c   :  { %v2288_v26 = vpop.eup %2287  ;;  %v879_v28 = vadd.f32 1.0, %v2286_v22 }
 0x35d   :  { %2291 = vpow2.f32 %v2129_v24  ;;  %v2804_v32 = vadd.f32 1.0, %v2288_v26  ;;  %v2806_v19 = vpop.eup %2289 }
 0x35e   :  { %2293 = vrcp.f32 %v879_v28  ;;  %v898_v40 = vmul.f32 %v2806_v19, %v2791_v18  ;;  %v938_v48 = vand.u32 2147483648, %v879_v28  ;;  %v936_v53 = vand.u32 2147483647, %v879_v28 }
 0x35f   :  { %2295 = vrcp.f32 %v2804_v32  ;;  %vm932_vm14 = vweird.f32 %v879_v28  ;;  %vm903_vm7 = vweird.f32 %v2806_v19 }
 0x360   :  { %v855_v34 = vpop.f32.mrf.mxu1  ;;  %v899_v47 = vsub.f32 1.0, %v898_v40  ;;  %v939_v0 = vor.u32 1.1754944e-38, %v938_v48  ;;  %vm937_vm5 = vcmp.eq.f32.partialorder %v936_v53, 8.507059e+37  ;;  %vm2849_vm11 = vmor %vm902_vm10, %vm903_vm7  ;;  %vm917_vm7 = vweird.f32 %v2804_v32 }
 0x361   :  { %v2808_v35 = vadd.f32 %v855_v34, %v804_v61 }
 0x362   :  { %v900_v62 = vmul.f32 %v2806_v19, %v899_v47 }
 0x363   :  { %v2292_v27 = vpop.eup %2291  ;;  %v2130_v38 = vmul.f32 -1.442695, %v2808_v35 }
 0x364   :  { %v2294_v39 = vpop.eup %2293  ;;  %v2814_v4 = vadd.f32 1.0, %v2292_v27  ;;  %v901_v22 = vadd.f32 %v2806_v19, %v900_v62  ;;  %v908_v27 = vand.u32 2147483648, %v2791_v18  ;;  %v921_v62 = vand.u32 2147483647, %v2804_v32 }
 0x365   :  { %v928_v41 = vmul.f32 %v2294_v39, %v879_v28  ;;  %2297 = vpow2.f32 %v2130_v38  ;;  %v2818_v33 = vpop.eup %2295  ;;  %vm933_vm12 = vweird.f32 %v2294_v39  ;;  %v906_v38 = vand.u32 2147483647, %v2791_v18 }
 0x366   :  { %2299 = vrcp.f32 %v2814_v4  ;;  %v913_v63 = vmul.f32 %v2818_v33, %v2804_v32  ;;  %vm934_vm15 = vmor %vm932_vm14, %vm933_vm12  ;;  %v953_v24 = vand.u32 2147483648, %v2814_v4  ;;  %v951_v28 = vand.u32 2147483647, %v2814_v4 }
 0x367   :  { %v929_v44 = vsub.f32 1.0, %v928_v41  ;;  %vm947_vm12 = vweird.f32 %v2814_v4  ;;  %v909_v18 = vor.u32 1.1754944e-38, %v908_v27 }
 0x368   :  { %v914_v23 = vsub.f32 1.0, %v913_v63  ;;  %vm952_vm14 = vcmp.eq.f32.partialorder %v951_v28, 8.507059e+37 }
 0x369   :  { %v930_v52 = vmul.f32 %v2294_v39, %v929_v44  ;;  %v905_v44 = vsel %vm2849_vm11, %v2806_v19, %v901_v22 }
 0x36a   :  { %v915_v43 = vmul.f32 %v2818_v33, %v914_v23 }
 0x36b   :  { %v2298_v58 = vpop.eup %2297  ;;  %v931_v59 = vadd.f32 %v2294_v39, %v930_v52 }
 0x36c   :  { %v2300_v61 = vpop.eup %2299  ;;  %v2831_v2 = vadd.f32 1.0, %v2298_v58  ;;  %v916_v57 = vadd.f32 %v2818_v33, %v915_v43 }
 0x36d   :  { %v935_v8 = vsel %vm934_vm15, %v2294_v39, %v931_v59  ;;  %v943_v5 = vmul.f32 %v2300_v61, %v2814_v4  ;;  %vm948_vm8 = vweird.f32 %v2300_v61  ;;  %vm907_vm15 = vcmp.eq.f32.partialorder %v906_v38, 8.507059e+37  ;;  %v61_v38 = vld [vmem:[%s3279_s5 + $0x8] sm:$0xff] }
 0x36e   :  { %v940_v10 = vsel %vm937_vm5, %v939_v0, %v935_v8  ;;  %2301 = vrcp.f32 %v2831_v2  ;;  %vm949_vm13 = vmor %vm947_vm12, %vm948_vm8  ;;  %v910_v56 = vsel %vm907_vm15, %v909_v18, %v905_v44  ;;  %vm918_vm5 = vweird.f32 %v2818_v33 }
 0x36f   :  { %v975_v14 = vmul.f32 %v940_v10, %v2780_v9  ;;  %v944_v54 = vsub.f32 1.0, %v943_v5  ;;  %v972_v9 = vmul.f32 %v895_v11, %v2770_v29  ;;  %v954_v29 = vor.u32 1.1754944e-38, %v953_v24  ;;  %vm2874_vm8 = vmor %vm917_vm7, %vm918_vm5 }
 0x370   :  { %v968_v58 = vand.u32 2147483648, %v2831_v2  ;;  %v966_v25 = vand.u32 2147483647, %v2831_v2  ;;  %v973_v0 = vmul.f32 %v910_v56, %v2773_v42  ;;  %vm962_vm10 = vweird.f32 %v2831_v2  ;;  %v138_v56 = vld [vmem:[#allocation2 + $0xf0] sm:$0xff] }
 0x371   :  { %v945_v26 = vmul.f32 %v2300_v61, %v944_v54  ;;  %v2843_v31 = vpop.f32.mrf.mxu3  ;;  %v982_v34 = vmul.f32 %v2837_v20, %v975_v14  ;;  %v979_v4 = vmul.f32 %v2837_v20, %v972_v9  ;;  %v2446_v9 = vmov 0  }
 0x372   :  { %v969_v10 = vor.u32 1.1754944e-38, %v968_v58  ;;  %vm967_vm12 = vcmp.eq.f32.partialorder %v966_v25, 8.507059e+37  ;;  %v980_v22 = vmul.f32 %v2837_v20, %v973_v0  ;;  %2230 = vset.pattern.permute.xlu1 %v2446_v9  ;;  %2229 = vset.pattern.permute.xlu0 %v2446_v9  ;;  %v137_v58 = vld [vmem:[#allocation2 + $0xe8] sm:$0xff] }
 0x373   :  { %v946_v39 = vadd.f32 %v2300_v61, %v945_v26  ;;  %v994_v40 = vsel %vm78_vm0, %v982_v34, 0.0  ;;  %v985_v63 = vsel %vm78_vm0, %v979_v4, 0.0  ;;  %v139_v4 = vld [vmem:[#allocation2 + $0xf8] sm:$0xff]  ;;  %v2933_v0 = vld [vmem:[%s3277_s3 + $0x8] sm:$0xff] }
 0x374   :  { %v2302_v41 = vpop.eup %2301  ;;  %995 = vadd.xlane.f32.xlu2 %v994_v40  ;;  %v988_v26 = vsel %vm78_vm0, %v980_v22, 0.0  ;;  %1196 = vmatpush.msra.mxu3 %v139_v4 }
 0x375   :  { %v950_v47 = vsel %vm949_vm13, %v2300_v61, %v946_v39  ;;  %v958_v48 = vmul.f32 %v2302_v41, %v2831_v2  ;;  %vm963_vm6 = vweird.f32 %v2302_v41  ;;  %vm922_vm13 = vcmp.eq.f32.partialorder %v921_v62, 8.507059e+37 }
 0x376   :  { %v955_v49 = vsel %vm952_vm14, %v954_v29, %v950_v47  ;;  %vm964_vm11 = vmor %vm962_vm10, %vm963_vm6  ;;  %1197 = vmatpush.msra.mxu3 %v138_v56  ;;  %v1217_v56 = vld [vmem:[#allocation2 + $0x150] sm:$0xff] }
 0x377   :  { %v976_v52 = vmul.f32 %v955_v49, %v2796_v36  ;;  %v959_v53 = vsub.f32 1.0, %v958_v48  ;;  %v923_v36 = vand.u32 2147483648, %v2804_v32  ;;  %v920_v32 = vsel %vm2874_vm8, %v2818_v33, %v916_v57 }
 0x378   :  { %1198 = vmatpush.msra.mxu3 %v137_v58  ;;  %v1216_v58 = vld [vmem:[#allocation2 + $0x148] sm:$0xff] }
 0x379   :  { %v960_v19 = vmul.f32 %v2302_v41, %v959_v53  ;;  %v1073_v59 = vpop.f32.mrf.mxu3  ;;  %v983_v61 = vmul.f32 %v2837_v20, %v976_v52  ;;  %v924_v42 = vor.u32 1.1754944e-38, %v923_v36  ;;  %v2368_v52 = vld [vmem:[%s3275_s1] sm:$0xff] }
 0x37a   :  { %2136 = vmatmul.msk.f32.vlgmr.msrb.gmra.mxu3 %vm78_vm0, %v1073_v59  ;;  %v136_v59 = vld [vmem:[#allocation2 + $0xe0] sm:$0xff] }
 0x37b   :  { %v961_v8 = vadd.f32 %v2302_v41, %v960_v19  ;;  %v997_v5 = vsel %vm78_vm0, %v983_v61, 0.0  ;;  %v925_v2 = vsel %vm922_vm13, %v924_v42, %v920_v32  ;;  %v2926_v19 = vld [vmem:[%s3277_s3] sm:$0xff]  ;;  %1199 = vmatpush.msra.mxu3 %v136_v59 }
 0x37c   :  { %986 = vadd.xlane.f32.xlu2 %v985_v63  ;;  %998 = vadd.xlane.f32.xlu1 %v997_v5  ;;  %v974_v24 = vmul.f32 %v925_v2, %v2778_v6  ;;  %v60_v6 = vld [vmem:[%s3279_s5] sm:$0xff]  ;;  %s2041_s5 = sshll.u32 %s2447_s21, 4  ;;  %s2042_s5 = int_to_ptr.vmem [resolvable:$true] %s2041_s5 }
 0x37d   :  { %v965_v11 = vsel %vm964_vm11, %v2302_v41, %v961_v8 }
 0x37e   :  { %v970_v14 = vsel %vm967_vm12, %v969_v10, %v965_v11  ;;  %v981_v33 = vmul.f32 %v2837_v20, %v974_v24  ;;  %v2371_v10 = vld [vmem:[%s3277_s3 + $0x10] sm:$0xff] }
 0x37f   :  { %v977_v54 = vmul.f32 %v970_v14, %v2808_v35 }
 0x380   :  { %v991_v34 = vsel %vm78_vm0, %v981_v33, 0.0 }
 0x381   :  { %v984_v23 = vmul.f32 %v2837_v20, %v977_v54  ;;  %v2372_v54 = vld [vmem:[%s3277_s3 + $0x18] sm:$0xff] }
 0x383   :  { %v1000_v28 = vsel %vm78_vm0, %v984_v23, 0.0 }
 0x384   :  { %989 = vadd.xlane.f32.xlu1 %v988_v26  ;;  %1001 = vadd.xlane.f32.xlu0 %v1000_v28 }
 0x38c   :  { %992 = vadd.xlane.f32.xlu0 %v991_v34 }
 0x39d   :  { %1041 = vperm.xlu1 %2230, %v60_v6  }
 0x3a0   :  { %1046 = vperm.xlu0 %2229, %v61_v38  }
 0x3e7   :  { %v996_v27 = vpop.xlane.xlu2 %995 }
 0x3e8   :  { %v1006_v40 = vmul.f32 %v996_v27, %v2606_v60 }
 0x3ef   :  { %v999_v35 = vpop.xlane.xlu1 %998  ;;  %v987_v44 = vpop.xlane.xlu2 %986 }
 0x3f0   :  { %v1007_v20 = vmul.f32 %v999_v35, %v2612_v1  ;;  %v1003_v48 = vmul.f32 %v987_v44, %v2588_v45  ;;  %v1128_v45 = vpop.f32.mrf.mxu0  ;;  %v2376_v44 = vld [vmem:[%s3277_s3 + $0x38] sm:$0xff] }
 0x3f7   :  { %v1002_v37 = vpop.xlane.xlu0 %1001  ;;  %v990_v41 = vpop.xlane.xlu1 %989 }
 0x3f8   :  { %v1008_v39 = vmul.f32 %v1002_v37, %v2620_v7  ;;  %v1004_v47 = vmul.f32 %v990_v41, %v2594_v50  ;;  %v1134_v7 = vperm.slane %v2714_v51, 1  ;;  %v2373_v37 = vld [vmem:[%s3277_s3 + $0x20] sm:$0xff]  ;;  %v2374_v41 = vld [vmem:[%s3277_s3 + $0x28] sm:$0xff] }
 0x3fa   :  { %1026 = vmatpush.msrb.mxu2 %v1008_v39 }
 0x3fc   :  { %1027 = vmatpush.msrb.mxu2 %v1007_v20 }
 0x3fd   :  { %v1102_v50 = vpop.f32.mrf.mxu3 }
 0x3fe   :  { %1028 = vmatpush.msrb.mxu2 %v1006_v40 }
 0x3ff   :  { %v993_v43 = vpop.xlane.xlu0 %992 }
 0x400   :  { %v1005_v29 = vmul.f32 %v993_v43, %v2600_v55  ;;  %v1131_v55 = vpop.f32.mrf.mxu0 }
 0x401   :  { %v1132_v1 = vadd.f32 %v1131_v55, %v1102_v50  ;;  %v2380_v50 = vld [vmem:[%s3277_s3 + $0x58] sm:$0xff] }
 0x402   :  { %1029 = vmatpush.msrb.mxu2 %v1005_v29  ;;  %v2375_v29 = vld [vmem:[%s3277_s3 + $0x30] sm:$0xff] }
 0x404   :  { %1030 = vmatpush.msrb.mxu2 %v1004_v47  ;;  %v2377_v47 = vld [vmem:[%s3277_s3 + $0x40] sm:$0xff] }
 0x406   :  { %1031 = vmatpush.msrb.mxu2 %v1003_v48  ;;  %v2378_v48 = vld [vmem:[%s3277_s3 + $0x48] sm:$0xff] }
 0x407   :  { %2131 = vmatmul.msk.f32.vlgmr.msrb.gmra.mxu2 %vm1009_vm9, %v2757_v12  ;;  %v2914_v12 = vadd.f32 %v1134_v7, %v1132_v1 }
 0x408   :  { %1094 = vmatpush.msra.mxu2 %v2785_v13 }
 0x40a   :  { %1095 = vmatpush.msra.mxu2 %v2788_v15 }
 0x40c   :  { %1096 = vmatpush.msra.mxu2 %v2793_v30 }
 0x40e   :  { %1097 = vmatpush.msra.mxu2 %v2798_v21  ;;  %v2140_v21 = vmul.f32 -1.442695, %v2914_v12 }
 0x40f   :  { %2132 = vmatmul.msk.f32.gmra.mxu2 %vm1009_vm9, %v2765_v46  ;;  %v1042_v13 = vpop.permute.xlu1 %1041  ;;  %v2367_v46 = vld [vmem:[%s3275_s1 + $0x8] sm:$0xff] }
 0x410   :  { %2303 = vpow2.f32 %v2140_v21 }
 0x412   :  { %v1047_v15 = vpop.permute.xlu0 %1046 }
 0x416   :  { %v2304_v61 = vpop.eup %2303 }
 0x417   :  { %2135 = vmatmul.msk.f32.vlgmr.msra.gmra.mxu2 %vm78_vm0, %v2843_v31  ;;  %v1144_v63 = vadd.f32 1.0, %v2304_v61 }
 0x419   :  { %v1171_v27 = vand.u32 2147483648, %v1144_v63  ;;  %vm1165_vm8 = vweird.f32 %v1144_v63  ;;  %v1169_v38 = vand.u32 2147483647, %v1144_v63 }
 0x41b   :  { %v1172_v20 = vor.u32 1.1754944e-38, %v1171_v27  ;;  %vm1170_vm11 = vcmp.eq.f32.partialorder %v1169_v38, 8.507059e+37 }
 0x48a   :  { %v1033_v60 = vpop.f32.mrf.mxu2 }
 0x48b   :  { %v1049_v18 = vmul.f32 %v1042_v13, %v1033_v60  ;;  %v1177_v60 = vperm.slane %v2714_v51, 2  ;;  %v1211_v51 = vld [vmem:[#allocation2 + $0x128] sm:$0xff] }
 0x48d   :  { %v1051_v53 = vadd.f32 %v2368_v52, %v1049_v18 }
 0x492   :  { %v1036_v30 = vpop.f32.mrf.mxu2 }
 0x493   :  { %v1050_v49 = vmul.f32 %v1047_v15, %v1036_v30  ;;  %v1210_v30 = vld [vmem:[#allocation2 + $0x120] sm:$0xff] }
 0x495   :  { %v1052_v31 = vadd.f32 %v2367_v46, %v1050_v49 }
 0x497   :  { %1306 = vmatpush.msra.mxu0 %v1052_v31 }
 0x499   :  { %1307 = vmatpush.msra.mxu0 %v1051_v53  ;;  %v1218_v53 = vld [vmem:[#allocation2 + $0x158] sm:$0xff] }
 0x49a   :  { %v1099_v57 = vpop.f32.mrf.mxu2  ;;  %2155 = vmatmul.msk.f32.vlgmr.msra.gmra.mxu0 %vm145_vm1, %v2926_v19  ;;  %1405 = vmatpush.msrb.mxu3 %v1218_v53 }
 0x49b   :  { %v1129_v25 = vadd.f32 %v1128_v45, %v1099_v57  ;;  %v2379_v45 = vld [vmem:[%s3277_s3 + $0x50] sm:$0xff] }
 0x49c   :  { %1406 = vmatpush.msrb.mxu3 %v1217_v56 }
 0x49d   :  { %v1135_v62 = vadd.f32 %v1134_v7, %v1129_v25  ;;  %v1215_v25 = vld [vmem:[#allocation2 + $0x140] sm:$0xff] }
 0x49e   :  { %1407 = vmatpush.msrb.mxu3 %v1216_v58  ;;  %v1223_v58 = vld [vmem:[#allocation2 + $0x178] sm:$0xff] }
 0x49f   :  { %v2139_v36 = vmul.f32 -1.442695, %v1135_v62 }
 0x4a0   :  { %1408 = vmatpush.msrb.mxu3 %v1215_v25 }
 0x4a1   :  { %2305 = vpow2.f32 %v2139_v36 }
 0x4a2   :  { %2156 = vmatmul.msk.f32.gmra.mxu0 %vm145_vm1, %v2933_v0  ;;  %2307 = vrcp.f32 %v1144_v63 }
 0x4a7   :  { %v2306_v3 = vpop.eup %2305 }
 0x4a8   :  { %v1143_v8 = vadd.f32 1.0, %v2306_v3  ;;  %v2308_v5 = vpop.eup %2307 }
 0x4a9   :  { %v1161_v32 = vmul.f32 %v2308_v5, %v1144_v63  ;;  %vm1166_vm7 = vweird.f32 %v2308_v5 }
 0x4aa   :  { %2309 = vrcp.f32 %v1143_v8  ;;  %2157 = vmatmul.msk.f32.gmra.mxu0 %vm145_vm1, %v2371_v10  ;;  %v1156_v2 = vand.u32 2147483648, %v1143_v8  ;;  %v1154_v24 = vand.u32 2147483647, %v1143_v8  ;;  %vm1150_vm15 = vweird.f32 %v1143_v8  ;;  %vm1167_vm10 = vmor %vm1165_vm8, %vm1166_vm7 }
 0x4ab   :  { %v1162_v14 = vsub.f32 1.0, %v1161_v32 }
 0x4ac   :  { %v1157_v33 = vor.u32 1.1754944e-38, %v1156_v2  ;;  %vm1155_vm6 = vcmp.eq.f32.partialorder %v1154_v24, 8.507059e+37 }
 0x4ad   :  { %v1163_v26 = vmul.f32 %v2308_v5, %v1162_v14 }
 0x4af   :  { %v1164_v9 = vadd.f32 %v2308_v5, %v1163_v26 }
 0x4b0   :  { %v2310_v11 = vpop.eup %2309 }
 0x4b1   :  { %v1146_v42 = vmul.f32 %v2310_v11, %v1143_v8  ;;  %vm1151_vm14 = vweird.f32 %v2310_v11  ;;  %v1168_v39 = vsel %vm1167_vm10, %v2308_v5, %v1164_v9 }
 0x4b2   :  { %2158 = vmatmul.msk.f32.gmra.mxu0 %vm145_vm1, %v2372_v54  ;;  %vm1152_vm5 = vmor %vm1150_vm15, %vm1151_vm14  ;;  %v1173_v40 = vsel %vm1170_vm11, %v1172_v20, %v1168_v39 }
 0x4b3   :  { %v1147_v22 = vsub.f32 1.0, %v1146_v42  ;;  %v1176_v43 = vmul.f32 %v1173_v40, %v2914_v12 }
 0x4b5   :  { %v1148_v23 = vmul.f32 %v2310_v11, %v1147_v22 }
 0x4b7   :  { %v1149_v28 = vadd.f32 %v2310_v11, %v1148_v23 }
 0x4b9   :  { %v1153_v34 = vsel %vm1152_vm5, %v2310_v11, %v1149_v28 }
 0x4ba   :  { %v1158_v35 = vsel %vm1155_vm6, %v1157_v33, %v1153_v34  ;;  %2159 = vmatmul.msk.f32.gmra.mxu0 %vm145_vm1, %v2373_v37 }
 0x4bb   :  { %v1175_v6 = vmul.f32 %v1158_v35, %v1135_v62 }
 0x4bd   :  { %2141 = vmatmul.msk.f32.vlgmr.msra.gmra.mxu3 %vm78_vm0, %v1175_v6  ;;  %v2381_v6 = vld [vmem:[%s3281_s7 + $0x8] sm:$0xff] }
 0x4be   :  { %v1497_v38 = vrot.slane %v2381_v6, 6  ;;  %v3061_v56 = vperm.slane %v2381_v6, 5 }
 0x4c2   :  { %2160 = vmatmul.msk.f32.gmra.mxu0 %vm145_vm1, %v2374_v41 }
 0x4c5   :  { %2142 = vmatmul.msk.f32.gmra.mxu3 %vm78_vm0, %v1176_v43 }
 0x4ca   :  { %2161 = vmatmul.msk.f32.gmra.mxu0 %vm145_vm1, %v2375_v29 }
 0x4d2   :  { %2162 = vmatmul.msk.f32.gmra.mxu0 %vm145_vm1, %v2376_v44 }
 0x4da   :  { %2163 = vmatmul.msk.f32.gmra.mxu0 %vm145_vm1, %v2377_v47 }
 0x4e2   :  { %2164 = vmatmul.msk.f32.gmra.mxu0 %vm145_vm1, %v2378_v48 }
 0x4ea   :  { %2165 = vmatmul.msk.f32.gmra.mxu0 %vm145_vm1, %v2379_v45 }
 0x4f2   :  { %2166 = vmatmul.msk.f32.gmra.mxu0 %vm145_vm1, %v2380_v50 }
 0x517   :  { %v1309_v21 = vpop.f32.mrf.mxu0 }
 0x51f   :  { %v1312_v18 = vpop.f32.mrf.mxu0 }
 0x527   :  { %v1315_v49 = vpop.f32.mrf.mxu0 }
 0x52f   :  { %v1318_v46 = vpop.f32.mrf.mxu0 }
 0x537   :  { %v1321_v4 = vpop.f32.mrf.mxu0 }
 0x53f   :  { %v1324_v57 = vpop.f32.mrf.mxu0 }
 0x540   :  { %v1201_v55 = vpop.f32.mrf.mxu3 }
 0x541   :  { %v1202_v7 = vadd.f32 %v1201_v55, %v1177_v60  ;;  %v1228_v55 = vld [vmem:[#allocation2 + $0x198] sm:$0xff] }
 0x543   :  { %v2985_v15 = vadd.f32 %v1202_v7, %v2537_v17  ;;  %v1212_v17 = vld [vmem:[#allocation2 + $0x130] sm:$0xff]  ;;  %v1225_v7 = vld [vmem:[#allocation2 + $0x180] sm:$0xff] }
 0x547   :  { %v1327_v59 = vpop.f32.mrf.mxu0 }
 0x548   :  { %v1204_v1 = vpop.f32.mrf.mxu3  ;;  %v1345_v61 = vsub.f32 %v1309_v21, %v1327_v59  ;;  %v1222_v59 = vld [vmem:[#allocation2 + $0x170] sm:$0xff] }
 0x549   :  { %v1205_v12 = vadd.f32 %v1204_v1, %v1177_v60  ;;  %v1227_v60 = vld [vmem:[#allocation2 + $0x190] sm:$0xff]  ;;  %v1226_v1 = vld [vmem:[#allocation2 + $0x188] sm:$0xff] }
 0x54a   :  { %v1351_v62 = vmul.f32 %v1345_v61, %v1345_v61 }
 0x54b   :  { %v2982_v13 = vadd.f32 %v1205_v12, %v2535_v16  ;;  %v1213_v16 = vld [vmem:[#allocation2 + $0x138] sm:$0xff]  ;;  %v2384_v12 = vld [vmem:[%s3276_s2 + $0x10] sm:$0xff] }
 0x54c   :  { %1458 = vmatpush.msra.mxu1 %v1213_v16  ;;  %v1357_v63 = vsel %vm300_vm2, %v1351_v62, 0.0  ;;  %v2385_v16 = vld [vmem:[%s3276_s2 + $0x18] sm:$0xff] }
 0x54d   :  { %1253 = vmatpush.msrb.mxu2 %v2982_v13  ;;  %1358 = vadd.xlane.f32.xlu2 %v1357_v63  ;;  %v1221_v63 = vld [vmem:[#allocation2 + $0x168] sm:$0xff] }
 0x54e   :  { %1459 = vmatpush.msra.mxu1 %v1212_v17  ;;  %v2386_v17 = vld [vmem:[%s3276_s2 + $0x20] sm:$0xff] }
 0x54f   :  { %1254 = vmatpush.msrb.mxu2 %v2985_v15 }
 0x550   :  { %2143 = vmatmul.msk.f32.vlgmr.msrb.gmra.mxu2 %vm145_vm1, %v2926_v19  ;;  %1460 = vmatpush.msra.mxu1 %v1211_v51  ;;  %v2387_v51 = vld [vmem:[%s3276_s2 + $0x28] sm:$0xff] }
 0x552   :  { %1461 = vmatpush.msra.mxu1 %v1210_v30 }
 0x554   :  { %1701 = vmatpush.msrb.mxu1 %v1223_v58 }
 0x556   :  { %1702 = vmatpush.msrb.mxu1 %v1222_v59 }
 0x558   :  { %2144 = vmatmul.msk.f32.gmra.mxu2 %vm145_vm1, %v2933_v0  ;;  %v1330_v0 = vpop.f32.mrf.mxu0  ;;  %1703 = vmatpush.msrb.mxu1 %v1221_v63 }
 0x559   :  { %v1346_v3 = vsub.f32 %v1312_v18, %v1330_v0 }
 0x55b   :  { %v1352_v8 = vmul.f32 %v1346_v3, %v1346_v3  ;;  %v1220_v3 = vld [vmem:[#allocation2 + $0x160] sm:$0xff] }
 0x55c   :  { %1704 = vmatpush.msrb.mxu1 %v1220_v3 }
 0x560   :  { %2145 = vmatmul.msk.f32.gmra.mxu2 %vm145_vm1, %v2371_v10  ;;  %v1360_v10 = vsel %vm300_vm2, %v1352_v8, 0.0  ;;  %v1333_v32 = vpop.f32.mrf.mxu0 }
 0x561   :  { %1361 = vadd.xlane.f32.xlu2 %v1360_v10  ;;  %v1347_v11 = vsub.f32 %v1315_v49, %v1333_v32 }
 0x563   :  { %v1353_v42 = vmul.f32 %v1347_v11, %v1347_v11 }
 0x568   :  { %2146 = vmatmul.msk.f32.gmra.mxu2 %vm145_vm1, %v2372_v54  ;;  %v1363_v54 = vsel %vm300_vm2, %v1353_v42, 0.0  ;;  %v1336_v22 = vpop.f32.mrf.mxu0 }
 0x569   :  { %1364 = vadd.xlane.f32.xlu2 %v1363_v54  ;;  %v1348_v2 = vsub.f32 %v1318_v46, %v1336_v22 }
 0x56b   :  { %v1354_v23 = vmul.f32 %v1348_v2, %v1348_v2 }
 0x56d   :  { %v1366_v26 = vsel %vm300_vm2, %v1354_v23, 0.0 }
 0x570   :  { %2147 = vmatmul.msk.f32.gmra.mxu2 %vm145_vm1, %v2373_v37  ;;  %v1339_v28 = vpop.f32.mrf.mxu0  ;;  %v3019_v37 = vld [vmem:[%s3281_s7 + $0x10] sm:$0xff] }
 0x571   :  { %1367 = vadd.xlane.f32.xlu2 %v1366_v26  ;;  %v1349_v33 = vsub.f32 %v1321_v4, %v1339_v28  ;;  %v1498_v20 = vrot.slane %v3019_v37, 6  ;;  %v3065_v62 = vperm.slane %v3019_v37, 2 }
 0x573   :  { %v1355_v34 = vmul.f32 %v1349_v33, %v1349_v33 }
 0x575   :  { %v1369_v35 = vsel %vm300_vm2, %v1355_v34, 0.0 }
 0x576   :  { %1370 = vadd.xlane.f32.xlu1 %v1369_v35 }
 0x578   :  { %2148 = vmatmul.msk.f32.gmra.mxu2 %vm145_vm1, %v2374_v41  ;;  %v1342_v27 = vpop.f32.mrf.mxu0 }
 0x579   :  { %v1350_v39 = vsub.f32 %v1324_v57, %v1342_v27 }
 0x57b   :  { %v1356_v41 = vmul.f32 %v1350_v39, %v1350_v39 }
 0x580   :  { %2149 = vmatmul.msk.f32.gmra.mxu2 %vm145_vm1, %v2375_v29  ;;  %v1372_v29 = vsel %vm300_vm2, %v1356_v41, 0.0 }
 0x581   :  { %1373 = vadd.xlane.f32.xlu2 %v1372_v29 }
 0x588   :  { %2150 = vmatmul.msk.f32.gmra.mxu2 %vm145_vm1, %v2376_v44 }
 0x590   :  { %2151 = vmatmul.msk.f32.gmra.mxu2 %vm145_vm1, %v2377_v47 }
 0x598   :  { %2152 = vmatmul.msk.f32.gmra.mxu2 %vm145_vm1, %v2378_v48 }
 0x5a0   :  { %2153 = vmatmul.msk.f32.gmra.mxu2 %vm145_vm1, %v2379_v45  ;;  %v2382_v45 = vld [vmem:[%s3276_s2] sm:$0xff] }
 0x5a8   :  { %2154 = vmatmul.msk.f32.gmra.mxu2 %vm145_vm1, %v2380_v50  ;;  %vm1496_vm1 = vcmask 1041408   ;;  %v2383_v50 = vld [vmem:[%s3276_s2 + $0x8] sm:$0xff] }
 0x5a9   :  { %v1499_v40 = vsel %vm1496_vm1, %v1497_v38, %v1498_v20 }
 0x5aa   :  { %2179 = vmatpush.msk.msra.mxu3 %vm459_vm3, %v1499_v40 }
 0x5c0   :  { %v1359_v4 = vpop.xlane.xlu2 %1358 }
 0x5d3   :  { %v1256_v31 = vpop.f32.mrf.mxu2 }
 0x5d4   :  { %2173 = vmatmul.msk.f32.vlgmr.msra.gmra.mxu1 %vm78_vm0, %v1256_v31  ;;  %v1362_v25 = vpop.xlane.xlu2 %1361 }
 0x5d5   :  { %v1483_v32 = vmul.f32 %v3061_v56, %v1362_v25 }
 0x5db   :  { %v1259_v52 = vpop.f32.mrf.mxu2 }
 0x5dc   :  { %2174 = vmatmul.msk.f32.gmra.mxu1 %vm78_vm0, %v1259_v52 }
 0x5e3   :  { %v1262_v19 = vpop.f32.mrf.mxu2 }
 0x5e4   :  { %2175 = vmatmul.msk.f32.gmra.mxu1 %vm78_vm0, %v1262_v19  ;;  %v1482_v19 = vmul.f32 %v3061_v56, %v1359_v4 }
 0x5eb   :  { %v1265_v36 = vpop.f32.mrf.mxu2 }
 0x5ec   :  { %2176 = vmatmul.msk.f32.gmra.mxu1 %vm78_vm0, %v1265_v36 }
 0x5f3   :  { %v1268_v5 = vpop.f32.mrf.mxu2 }
 0x5f4   :  { %2177 = vmatmul.msk.f32.gmra.mxu1 %vm78_vm0, %v1268_v5 }
 0x5fb   :  { %v1271_v14 = vpop.f32.mrf.mxu2 }
 0x5fc   :  { %2178 = vmatmul.msk.f32.gmra.mxu1 %vm78_vm0, %v1271_v14  ;;  %v1365_v14 = vpop.xlane.xlu2 %1364 }
 0x5fd   :  { %v1484_v28 = vmul.f32 %v3061_v56, %v1365_v14 }
 0x603   :  { %v1274_v24 = vpop.f32.mrf.mxu2 }
 0x604   :  { %2167 = vmatmul.msk.f32.vlgmr.msrb.gmra.mxu3 %vm78_vm0, %v1274_v24  ;;  %v1368_v6 = vpop.xlane.xlu2 %1367 }
 0x605   :  { %1914 = vmatpush.msrb.mxu3 %v1228_v55  ;;  %v1485_v40 = vmul.f32 %v3061_v56, %v1368_v6 }
 0x607   :  { %1915 = vmatpush.msrb.mxu3 %v1227_v60 }
 0x609   :  { %1916 = vmatpush.msrb.mxu3 %v1226_v1 }
 0x60b   :  { %v1277_v9 = vpop.f32.mrf.mxu2  ;;  %1917 = vmatpush.msrb.mxu3 %v1225_v7 }
 0x60c   :  { %2168 = vmatmul.msk.f32.gmra.mxu3 %vm78_vm0, %v1277_v9  ;;  %v1374_v59 = vpop.xlane.xlu2 %1373 }
 0x613   :  { %v1280_v43 = vpop.f32.mrf.mxu2 }
 0x614   :  { %2169 = vmatmul.msk.f32.gmra.mxu3 %vm78_vm0, %v1280_v43 }
 0x61b   :  { %v1283_v44 = vpop.f32.mrf.mxu2 }
 0x61c   :  { %2170 = vmatmul.msk.f32.gmra.mxu3 %vm78_vm0, %v1283_v44 }
 0x623   :  { %v1286_v47 = vpop.f32.mrf.mxu2 }
 0x624   :  { %2171 = vmatmul.msk.f32.gmra.mxu3 %vm78_vm0, %v1286_v47 }
 0x62b   :  { %v1289_v48 = vpop.f32.mrf.mxu2 }
 0x62c   :  { %2172 = vmatmul.msk.f32.gmra.mxu3 %vm78_vm0, %v1289_v48 }
 0x634   :  { %2180 = vmatmul.msk.f32.vlgmr.msra.gmra.mxu3 %vm440_vm4, %v2382_v45 }
 0x63c   :  { %2181 = vmatmul.msk.f32.gmra.mxu3 %vm440_vm4, %v2383_v50  ;;  %v1371_v50 = vpop.xlane.xlu1 %1370 }
 0x644   :  { %2182 = vmatmul.msk.f32.gmra.mxu3 %vm440_vm4, %v2384_v12 }
 0x64c   :  { %2183 = vmatmul.msk.f32.gmra.mxu3 %vm440_vm4, %v2385_v16 }
 0x651   :  { %v1463_v46 = vpop.f32.mrf.mxu1 }
 0x654   :  { %2184 = vmatmul.msk.f32.gmra.mxu3 %vm440_vm4, %v2386_v17 }
 0x659   :  { %v1466_v53 = vpop.f32.mrf.mxu1 }
 0x65c   :  { %2185 = vmatmul.msk.f32.gmra.mxu3 %vm440_vm4, %v2387_v51  ;;  %v1486_v51 = vmul.f32 %v3061_v56, %v1371_v50 }
 0x661   :  { %v1469_v8 = vpop.f32.mrf.mxu1 }
 0x664   :  { %2208 = vmatmul.msk.f32.vlgmr.msrb.gmra.mxu3 %vm78_vm0, %v2985_v15 }
 0x669   :  { %v1472_v26 = vpop.f32.mrf.mxu1 }
 0x66c   :  { %2209 = vmatmul.msk.f32.gmra.mxu3 %vm78_vm0, %v2982_v13 }
 0x671   :  { %v1475_v44 = vpop.f32.mrf.mxu1 }
 0x679   :  { %v1478_v25 = vpop.f32.mrf.mxu1 }
 0x687   :  { %v1410_v30 = vpop.f32.mrf.mxu3 }
 0x688   :  { %v1464_v57 = vadd.f32 %v1463_v46, %v1410_v30 }
 0x68a   :  { %v1488_v61 = vadd.f32 %v1482_v19, %v1464_v57 }
 0x68f   :  { %v1413_v21 = vpop.f32.mrf.mxu3 }
 0x690   :  { %v1467_v5 = vadd.f32 %v1466_v53, %v1413_v21 }
 0x692   :  { %v1489_v42 = vadd.f32 %v1483_v32, %v1467_v5 }
 0x697   :  { %v1416_v18 = vpop.f32.mrf.mxu3 }
 0x698   :  { %v1470_v2 = vadd.f32 %v1469_v8, %v1416_v18 }
 0x69a   :  { %v1490_v9 = vadd.f32 %v1484_v28, %v1470_v2 }
 0x69f   :  { %v1419_v49 = vpop.f32.mrf.mxu3 }
 0x6a0   :  { %v1473_v38 = vadd.f32 %v1472_v26, %v1419_v49 }
 0x6a2   :  { %v1491_v48 = vadd.f32 %v1485_v40, %v1473_v38 }
 0x6a7   :  { %v1422_v31 = vpop.f32.mrf.mxu3 }
 0x6a8   :  { %v1476_v1 = vadd.f32 %v1475_v44, %v1422_v31 }
 0x6aa   :  { %v1492_v53 = vadd.f32 %v1486_v51, %v1476_v1 }
 0x6af   :  { %v3059_v52 = vpop.f32.mrf.mxu3 }
 0x6b7   :  { %v1519_v36 = vpop.f32.mrf.mxu3 }
 0x6b8   :  { %v1537_v0 = vadd.f32 %v1519_v36, %v1488_v61 }
 0x6ba   :  { %v3068_v10 = vadd.f32 %v3065_v62, %v1537_v0  ;;  %v1479_v0 = vadd.f32 %v1478_v25, %v3059_v52 }
 0x6bc   :  { %v2186_v11 = vmul.f32 -1.442695, %v3068_v10 }
 0x6be   :  { %2311 = vpow2.f32 %v2186_v11  ;;  %v1487_v11 = vmul.f32 %v3061_v56, %v1374_v59 }
 0x6bf   :  { %v1522_v54 = vpop.f32.mrf.mxu3 }
 0x6c0   :  { %v1538_v22 = vadd.f32 %v1522_v54, %v1489_v42  ;;  %v1493_v2 = vadd.f32 %v1487_v11, %v1479_v0 }
 0x6c2   :  { %v3073_v23 = vadd.f32 %v3065_v62, %v1538_v22 }
 0x6c4   :  { %v2312_v24 = vpop.eup %2311  ;;  %v2187_v33 = vmul.f32 -1.442695, %v3073_v23 }
 0x6c5   :  { %v1568_v34 = vadd.f32 1.0, %v2312_v24 }
 0x6c6   :  { %2313 = vpow2.f32 %v2187_v33 }
 0x6c7   :  { %2315 = vrcp.f32 %v1568_v34  ;;  %v1525_v35 = vpop.f32.mrf.mxu3  ;;  %v1585_v7 = vand.u32 2147483648, %v1568_v34  ;;  %v1583_v16 = vand.u32 2147483647, %v1568_v34  ;;  %vm1579_vm3 = vweird.f32 %v1568_v34 }
 0x6c8   :  { %v1539_v27 = vadd.f32 %v1525_v35, %v1490_v9 }
 0x6c9   :  { %v1586_v46 = vor.u32 1.1754944e-38, %v1585_v7  ;;  %vm1584_vm12 = vcmp.eq.f32.partialorder %v1583_v16, 8.507059e+37 }
 0x6ca   :  { %v3078_v39 = vadd.f32 %v3065_v62, %v1539_v27 }
 0x6cc   :  { %v2314_v20 = vpop.eup %2313  ;;  %v2188_v41 = vmul.f32 -1.442695, %v3078_v39 }
 0x6cd   :  { %v2316_v43 = vpop.eup %2315  ;;  %v1569_v29 = vadd.f32 1.0, %v2314_v20 }
 0x6ce   :  { %v1575_v47 = vmul.f32 %v2316_v43, %v1568_v34  ;;  %2317 = vpow2.f32 %v2188_v41  ;;  %vm1580_vm2 = vweird.f32 %v2316_v43 }
 0x6cf   :  { %2319 = vrcp.f32 %v1569_v29  ;;  %v1528_v45 = vpop.f32.mrf.mxu3  ;;  %vm1581_vm4 = vmor %vm1579_vm3, %vm1580_vm2  ;;  %v1600_v3 = vand.u32 2147483648, %v1569_v29  ;;  %v1598_v5 = vand.u32 2147483647, %v1569_v29  ;;  %vm1594_vm14 = vweird.f32 %v1569_v29 }
 0x6d0   :  { %v1576_v55 = vsub.f32 1.0, %v1575_v47  ;;  %v1540_v60 = vadd.f32 %v1528_v45, %v1491_v48 }
 0x6d1   :  { %v1601_v22 = vor.u32 1.1754944e-38, %v1600_v3  ;;  %vm1599_vm5 = vcmp.eq.f32.partialorder %v1598_v5, 8.507059e+37 }
 0x6d2   :  { %v1577_v12 = vmul.f32 %v2316_v43, %v1576_v55  ;;  %v3083_v17 = vadd.f32 %v3065_v62, %v1540_v60 }
 0x6d4   :  { %v2318_v30 = vpop.eup %2317  ;;  %v1578_v21 = vadd.f32 %v2316_v43, %v1577_v12  ;;  %v2189_v18 = vmul.f32 -1.442695, %v3083_v17 }
 0x6d5   :  { %v2320_v49 = vpop.eup %2319  ;;  %v1570_v4 = vadd.f32 1.0, %v2318_v30 }
 0x6d6   :  { %v1582_v31 = vsel %vm1581_vm4, %v2316_v43, %v1578_v21  ;;  %v1590_v57 = vmul.f32 %v2320_v49, %v1569_v29  ;;  %2321 = vpow2.f32 %v2189_v18  ;;  %vm1595_vm13 = vweird.f32 %v2320_v49 }
 0x6d7   :  { %v1587_v58 = vsel %vm1584_vm12, %v1586_v46, %v1582_v31  ;;  %2323 = vrcp.f32 %v1570_v4  ;;  %v1531_v19 = vpop.f32.mrf.mxu3  ;;  %vm1596_vm15 = vmor %vm1594_vm14, %vm1595_vm13  ;;  %v1615_v35 = vand.u32 2147483648, %v1570_v4  ;;  %v1613_v6 = vand.u32 2147483647, %v1570_v4 }
 0x6d8   :  { %v1664_v61 = vmul.f32 %v1587_v58, %v3068_v10  ;;  %v1591_v36 = vsub.f32 1.0, %v1590_v57  ;;  %v1541_v63 = vadd.f32 %v1531_v19, %v1492_v53  ;;  %vm1609_vm7 = vweird.f32 %v1570_v4 }
 0x6d9   :  { %v1616_v29 = vor.u32 1.1754944e-38, %v1615_v35  ;;  %vm1614_vm10 = vcmp.eq.f32.partialorder %v1613_v6, 8.507059e+37 }
 0x6da   :  { %v1592_v8 = vmul.f32 %v2320_v49, %v1591_v36  ;;  %v3090_v32 = vadd.f32 %v3065_v62, %v1541_v63  ;;  %2192 = vmatmul.msk.f32.vlgmr.msrb.gmra.mxu1 %vm78_vm0, %v1664_v61 }
 0x6dc   :  { %v2322_v42 = vpop.eup %2321  ;;  %v1593_v14 = vadd.f32 %v2320_v49, %v1592_v8  ;;  %v2190_v10 = vmul.f32 -1.442695, %v3090_v32 }
 0x6dd   :  { %v2324_v54 = vpop.eup %2323  ;;  %v1571_v52 = vadd.f32 1.0, %v2322_v42 }
 0x6de   :  { %v1597_v24 = vsel %vm1596_vm15, %v2320_v49, %v1593_v14  ;;  %v1605_v26 = vmul.f32 %v2324_v54, %v1570_v4  ;;  %2325 = vpow2.f32 %v2190_v10  ;;  %vm1610_vm6 = vweird.f32 %v2324_v54 }
 0x6df   :  { %v1602_v28 = vsel %vm1599_vm5, %v1601_v22, %v1597_v24  ;;  %2327 = vrcp.f32 %v1571_v52  ;;  %v1534_v33 = vpop.f32.mrf.mxu3  ;;  %vm1611_vm8 = vmor %vm1609_vm7, %vm1610_vm6  ;;  %v1630_v50 = vand.u32 2147483648, %v1571_v52  ;;  %v1628_v60 = vand.u32 2147483647, %v1571_v52 }
 0x6e0   :  { %v1665_v34 = vmul.f32 %v1602_v28, %v3073_v23  ;;  %v1606_v56 = vsub.f32 1.0, %v1605_v26  ;;  %v1542_v9 = vadd.f32 %v1534_v33, %v1493_v2  ;;  %vm1624_vm1 = vweird.f32 %v1571_v52 }
 0x6e1   :  { %v1631_v16 = vor.u32 1.1754944e-38, %v1630_v50  ;;  %vm1629_vm3 = vcmp.eq.f32.partialorder %v1628_v60, 8.507059e+37  ;;  %v1670_v10 = vperm.slane %v3019_v37, 3 }
 0x6e2   :  { %v1607_v27 = vmul.f32 %v2324_v54, %v1606_v56  ;;  %v3097_v38 = vadd.f32 %v3065_v62, %v1542_v9  ;;  %2193 = vmatmul.msk.f32.gmra.mxu1 %vm78_vm0, %v1665_v34 }
 0x6e4   :  { %v2326_v20 = vpop.eup %2325  ;;  %v1608_v40 = vadd.f32 %v2324_v54, %v1607_v27  ;;  %v2191_v41 = vmul.f32 -1.442695, %v3097_v38 }
 0x6e5   :  { %v2328_v43 = vpop.eup %2327  ;;  %v1572_v23 = vadd.f32 1.0, %v2326_v20 }
 0x6e6   :  { %v1612_v44 = vsel %vm1611_vm8, %v2324_v54, %v1608_v40  ;;  %v1620_v47 = vmul.f32 %v2328_v43, %v1571_v52  ;;  %2329 = vpow2.f32 %v2191_v41  ;;  %vm1625_vm11 = vweird.f32 %v2328_v43 }
 0x6e7   :  { %v1617_v48 = vsel %vm1614_vm10, %v1616_v29, %v1612_v44  ;;  %2331 = vrcp.f32 %v1572_v23  ;;  %vm1626_vm2 = vmor %vm1624_vm1, %vm1625_vm11  ;;  %v1645_v46 = vand.u32 2147483648, %v1572_v23  ;;  %v1643_v53 = vand.u32 2147483647, %v1572_v23 }
 0x6e8   :  { %v1666_v62 = vmul.f32 %v1617_v48, %v3078_v39  ;;  %v1621_v45 = vsub.f32 1.0, %v1620_v47  ;;  %vm1639_vm12 = vweird.f32 %v1572_v23 }
 0x6e9   :  { %v1646_v58 = vor.u32 1.1754944e-38, %v1645_v46  ;;  %vm1644_vm14 = vcmp.eq.f32.partialorder %v1643_v53, 8.507059e+37 }
 0x6ea   :  { %v1622_v55 = vmul.f32 %v2328_v43, %v1621_v45  ;;  %2194 = vmatmul.msk.f32.gmra.mxu1 %vm78_vm0, %v1666_v62 }
 0x6ec   :  { %v2330_v1 = vpop.eup %2329  ;;  %v1623_v7 = vadd.f32 %v2328_v43, %v1622_v55 }
 0x6ed   :  { %v2332_v12 = vpop.eup %2331  ;;  %v1573_v51 = vadd.f32 1.0, %v2330_v1 }
 0x6ee   :  { %v1627_v30 = vsel %vm1626_vm2, %v2328_v43, %v1623_v7  ;;  %v1635_v21 = vmul.f32 %v2332_v12, %v1572_v23  ;;  %vm1640_vm4 = vweird.f32 %v2332_v12 }
 0x6ef   :  { %v1632_v18 = vsel %vm1629_vm3, %v1631_v16, %v1627_v30  ;;  %2333 = vrcp.f32 %v1573_v51  ;;  %vm1641_vm13 = vmor %vm1639_vm12, %vm1640_vm4  ;;  %v1658_v0 = vand.u32 2147483647, %v1573_v51  ;;  %vm1654_vm5 = vweird.f32 %v1573_v51 }
 0x6f0   :  { %v1667_v39 = vmul.f32 %v1632_v18, %v3083_v17  ;;  %v1636_v49 = vsub.f32 1.0, %v1635_v21  ;;  %v1660_v17 = vand.u32 2147483648, %v1573_v51 }
 0x6f1   :  { %vm1659_vm7 = vcmp.eq.f32.partialorder %v1658_v0, 8.507059e+37 }
 0x6f2   :  { %v1637_v4 = vmul.f32 %v2332_v12, %v1636_v49  ;;  %2195 = vmatmul.msk.f32.gmra.mxu1 %vm78_vm0, %v1667_v39  ;;  %v1661_v8 = vor.u32 1.1754944e-38, %v1660_v17 }
 0x6f4   :  { %v1638_v31 = vadd.f32 %v2332_v12, %v1637_v4 }
 0x6f5   :  { %v2334_v57 = vpop.eup %2333 }
 0x6f6   :  { %v1642_v19 = vsel %vm1641_vm13, %v2332_v12, %v1638_v31  ;;  %v1650_v25 = vmul.f32 %v2334_v57, %v1573_v51  ;;  %vm1655_vm15 = vweird.f32 %v2334_v57 }
 0x6f7   :  { %v1647_v59 = vsel %vm1644_vm14, %v1646_v58, %v1642_v19  ;;  %vm1656_vm6 = vmor %vm1654_vm5, %vm1655_vm15 }
 0x6f8   :  { %v1668_v61 = vmul.f32 %v1647_v59, %v3090_v32  ;;  %v1651_v36 = vsub.f32 1.0, %v1650_v25  ;;  %v1233_v25 = vld [vmem:[#allocation2 + $0x1b8] sm:$0xff]  ;;  %v1232_v59 = vld [vmem:[#allocation2 + $0x1b0] sm:$0xff] }
 0x6f9   :  { %1885 = vmatpush.msrb.mxu0 %v1233_v25 }
 0x6fa   :  { %v1652_v63 = vmul.f32 %v2334_v57, %v1651_v36  ;;  %2196 = vmatmul.msk.f32.gmra.mxu1 %vm78_vm0, %v1668_v61 }
 0x6fb   :  { %1886 = vmatpush.msrb.mxu0 %v1232_v59  ;;  %v1237_v59 = vld [vmem:[#allocation2 + $0x1d0] sm:$0xff] }
 0x6fc   :  { %v1653_v3 = vadd.f32 %v2334_v57, %v1652_v63 }
 0x6fe   :  { %v1657_v5 = vsel %vm1656_vm6, %v2334_v57, %v1653_v3 }
 0x6ff   :  { %v1662_v11 = vsel %vm1659_vm7, %v1661_v8, %v1657_v5  ;;  %v1231_v8 = vld [vmem:[#allocation2 + $0x1a8] sm:$0xff] }
 0x700   :  { %v1669_v42 = vmul.f32 %v1662_v11, %v3097_v38  ;;  %1887 = vmatpush.msrb.mxu0 %v1231_v8 }
 0x702   :  { %2197 = vmatmul.msk.f32.gmra.mxu1 %vm78_vm0, %v1669_v42 }
 0x757   :  { %v1706_v14 = vpop.f32.mrf.mxu1 }
 0x758   :  { %v3110_v22 = vadd.f32 %v1706_v14, %v1670_v10 }
 0x75a   :  { %v2198_v24 = vmul.f32 -1.442695, %v3110_v22 }
 0x75c   :  { %2335 = vpow2.f32 %v2198_v24 }
 0x75f   :  { %v1709_v32 = vpop.f32.mrf.mxu1 }
 0x760   :  { %v3112_v52 = vadd.f32 %v1709_v32, %v1670_v10 }
 0x762   :  { %v2199_v28 = vmul.f32 -1.442695, %v3112_v52  ;;  %v2336_v27 = vpop.eup %2335 }
 0x763   :  { %v3125_v41 = vadd.f32 1.0, %v2336_v27 }
 0x764   :  { %2337 = vpow2.f32 %v2199_v28 }
 0x767   :  { %v1712_v54 = vpop.f32.mrf.mxu1 }
 0x768   :  { %v3114_v2 = vadd.f32 %v1712_v54, %v1670_v10 }
 0x76a   :  { %v2200_v34 = vmul.f32 -1.442695, %v3114_v2  ;;  %v2338_v6 = vpop.eup %2337 }
 0x76b   :  { %v3127_v43 = vadd.f32 1.0, %v2338_v6 }
 0x76c   :  { %2339 = vpow2.f32 %v2200_v34 }
 0x76d   :  { %v1772_v19 = vand.u32 2147483647, %v3127_v43  ;;  %vm1768_vm1 = vweird.f32 %v3127_v43 }
 0x76f   :  { %v1715_v26 = vpop.f32.mrf.mxu1 }
 0x770   :  { %v3118_v33 = vadd.f32 %v1715_v26, %v1670_v10 }
 0x772   :  { %v2201_v56 = vmul.f32 -1.442695, %v3118_v33  ;;  %v2340_v20 = vpop.eup %2339 }
 0x773   :  { %v3129_v29 = vadd.f32 1.0, %v2340_v20 }
 0x774   :  { %2341 = vpow2.f32 %v2201_v56 }
 0x775   :  { %vm1783_vm10 = vweird.f32 %v3129_v29  ;;  %v1787_v3 = vand.u32 2147483647, %v3129_v29  ;;  %v1789_v20 = vand.u32 2147483648, %v3129_v29 }
 0x777   :  { %v1718_v9 = vpop.f32.mrf.mxu1 }
 0x778   :  { %v3122_v35 = vadd.f32 %v1718_v9, %v1670_v10 }
 0x77a   :  { %v2202_v38 = vmul.f32 -1.442695, %v3122_v35  ;;  %v2342_v40 = vpop.eup %2341 }
 0x77b   :  { %v3131_v23 = vadd.f32 1.0, %v2342_v40 }
 0x77c   :  { %2343 = vpow2.f32 %v2202_v38 }
 0x77d   :  { %2345 = vrcp.f32 %v3125_v41  ;;  %vm1798_vm14 = vweird.f32 %v3131_v23  ;;  %v1802_v26 = vand.u32 2147483647, %v3131_v23  ;;  %v1804_v28 = vand.u32 2147483648, %v3131_v23 }
 0x77e   :  { %2347 = vrcp.f32 %v3127_v43 }
 0x77f   :  { %v1721_v44 = vpop.f32.mrf.mxu1  ;;  %2349 = vrcp.f32 %v3129_v29 }
 0x780   :  { %v3134_v47 = vadd.f32 %v1721_v44, %v1670_v10  ;;  %2351 = vrcp.f32 %v3131_v23 }
 0x782   :  { %v2344_v48 = vpop.eup %2343  ;;  %v2203_v62 = vmul.f32 -1.442695, %v3134_v47 }
 0x783   :  { %v3140_v45 = vadd.f32 1.0, %v2344_v48  ;;  %v3143_v50 = vpop.eup %2345 }
 0x784   :  { %2353 = vpow2.f32 %v2203_v62  ;;  %v3145_v55 = vpop.eup %2347  ;;  %v1749_v51 = vmul.f32 %v3143_v50, %v3125_v41  ;;  %vm1754_vm11 = vweird.f32 %v3143_v50  ;;  %v1774_v62 = vand.u32 2147483648, %v3127_v43 }
 0x785   :  { %2355 = vrcp.f32 %v3140_v45  ;;  %v3147_v60 = vpop.eup %2349  ;;  %v1764_v18 = vmul.f32 %v3145_v55, %v3127_v43  ;;  %vm1769_vm8 = vweird.f32 %v3145_v55  ;;  %vm1813_vm4 = vweird.f32 %v3140_v45  ;;  %v2388_v43 = vld [vmem:[%s3278_s4] sm:$0xff] }
 0x786   :  { %v3149_v1 = vpop.eup %2351  ;;  %v1779_v39 = vmul.f32 %v3147_v60, %v3129_v29  ;;  %v1750_v46 = vsub.f32 1.0, %v1749_v51  ;;  %v1817_v42 = vand.u32 2147483647, %v3140_v45  ;;  %v1819_v14 = vand.u32 2147483648, %v3140_v45 }
 0x787   :  { %v1794_v30 = vmul.f32 %v3149_v1, %v3131_v23  ;;  %v1765_v53 = vsub.f32 1.0, %v1764_v18  ;;  %vm1799_vm2 = vweird.f32 %v3149_v1  ;;  %vm1784_vm13 = vweird.f32 %v3147_v60 }
 0x788   :  { %v1780_v31 = vsub.f32 1.0, %v1779_v39  ;;  %v1751_v61 = vmul.f32 %v3143_v50, %v1750_v46  ;;  %vm3194_vm5 = vmor %vm1798_vm14, %vm1799_vm2  ;;  %v1820_v40 = vor.u32 1.1754944e-38, %v1819_v14  ;;  %vm1818_vm2 = vcmp.eq.f32.partialorder %v1817_v42, 8.507059e+37 }
 0x789   :  { %v1795_v4 = vsub.f32 1.0, %v1794_v30  ;;  %v1766_v63 = vmul.f32 %v3145_v55, %v1765_v53  ;;  %vm1753_vm14 = vweird.f32 %v3125_v41  ;;  %v1759_v29 = vand.u32 2147483648, %v3125_v41 }
 0x78a   :  { %v2354_v7 = vpop.eup %2353  ;;  %v1781_v0 = vmul.f32 %v3147_v60, %v1780_v31  ;;  %v1752_v51 = vadd.f32 %v3143_v50, %v1751_v61  ;;  %v1790_v18 = vor.u32 1.1754944e-38, %v1789_v20  ;;  %v1775_v46 = vor.u32 1.1754944e-38, %v1774_v62 }
 0x78b   :  { %v3151_v12 = vpop.eup %2355  ;;  %v1747_v16 = vadd.f32 1.0, %v2354_v7  ;;  %v1796_v36 = vmul.f32 %v3149_v1, %v1795_v4  ;;  %v1767_v38 = vadd.f32 %v3145_v55, %v1766_v63  ;;  %v1805_v7 = vor.u32 1.1754944e-38, %v1804_v28 }
 0x78c   :  { %v1809_v21 = vmul.f32 %v3151_v12, %v3140_v45  ;;  %vm1814_vm3 = vweird.f32 %v3151_v12  ;;  %v1782_v56 = vadd.f32 %v3147_v60, %v1781_v0  ;;  %v1760_v31 = vor.u32 1.1754944e-38, %v1759_v29  ;;  %v1235_v0 = vld [vmem:[#allocation2 + $0x1c0] sm:$0xff] }
 0x78d   :  { %2357 = vrcp.f32 %v1747_v16  ;;  %v1834_v32 = vand.u32 2147483648, %v1747_v16  ;;  %v1797_v10 = vadd.f32 %v3149_v1, %v1796_v36  ;;  %v1832_v24 = vand.u32 2147483647, %v1747_v16  ;;  %vm3187_vm15 = vmor %vm1813_vm4, %vm1814_vm3 }
 0x78e   :  { %v1810_v49 = vsub.f32 1.0, %v1809_v21  ;;  %vm1828_vm6 = vweird.f32 %v1747_v16  ;;  %vm3212_vm4 = vmor %vm1783_vm10, %vm1784_vm13  ;;  %vm1788_vm13 = vcmp.eq.f32.partialorder %v1787_v3, 8.507059e+37  ;;  %v1925_v61 = vperm.slane %v3019_v37, 4 }
 0x78f   :  { %v1835_v23 = vor.u32 1.1754944e-38, %v1834_v32  ;;  %v1801_v44 = vsel %vm3194_vm5, %v3149_v1, %v1797_v10  ;;  %vm1833_vm3 = vcmp.eq.f32.partialorder %v1832_v24, 8.507059e+37  ;;  %v1786_v1 = vsel %vm3212_vm4, %v3147_v60, %v1782_v56  ;;  %vm3227_vm10 = vmor %vm1768_vm1, %vm1769_vm8  ;;  %v2004_v32 = vld [vmem:[#allocation2 + $0x38] sm:$0xff] }
 0x790   :  { %v1811_v57 = vmul.f32 %v3151_v12, %v1810_v49  ;;  %v1757_v49 = vand.u32 2147483647, %v3125_v41  ;;  %v1791_v4 = vsel %vm1788_vm13, %v1790_v18, %v1786_v1  ;;  %vm1773_vm8 = vcmp.eq.f32.partialorder %v1772_v19, 8.507059e+37  ;;  %v1919_v19 = vpop.f32.mrf.mxu3 }
 0x792   :  { %v1812_v5 = vadd.f32 %v3151_v12, %v1811_v57  ;;  %vm1758_vm1 = vcmp.eq.f32.partialorder %v1757_v49, 8.507059e+37  ;;  %v2002_v49 = vld [vmem:[#allocation2 + $0x28] sm:$0xff] }
 0x793   :  { %v2358_v58 = vpop.eup %2357 }
 0x794   :  { %v1824_v17 = vmul.f32 %v2358_v58, %v1747_v16  ;;  %vm1829_vm12 = vweird.f32 %v2358_v58  ;;  %v1816_v27 = vsel %vm3187_vm15, %v3151_v12, %v1812_v5  ;;  %vm1755_vm15 = vmor %vm1753_vm14, %vm1754_vm11 }
 0x795   :  { %vm1830_vm7 = vmor %vm1828_vm6, %vm1829_vm12  ;;  %v1821_v12 = vsel %vm1818_vm2, %v1820_v40, %v1816_v27  ;;  %vm1803_vm12 = vcmp.eq.f32.partialorder %v1802_v26, 8.507059e+37  ;;  %v1756_v53 = vsel %vm1755_vm15, %v3143_v50, %v1752_v51  ;;  %v1238_v50 = vld [vmem:[#allocation2 + $0x1d8] sm:$0xff] }
 0x796   :  { %v1825_v11 = vsub.f32 1.0, %v1824_v17  ;;  %v1806_v39 = vsel %vm1803_vm12, %v1805_v7, %v1801_v44  ;;  %v1842_v60 = vmul.f32 %v1821_v12, %v3122_v35  ;;  %v1761_v35 = vsel %vm1758_vm1, %v1760_v31, %v1756_v53  ;;  %2220 = vmatpush.msra.mxu1 %v1238_v50  ;;  %v1236_v17 = vld [vmem:[#allocation2 + $0x1c8] sm:$0xff] }
 0x797   :  { %v1841_v41 = vmul.f32 %v1806_v39, %v3118_v33  ;;  %v1838_v25 = vmul.f32 %v1761_v35, %v3110_v22  ;;  %v2389_v33 = vld [vmem:[%s3278_s4 + $0x8] sm:$0xff]  ;;  %v2003_v39 = vld [vmem:[#allocation2 + $0x30] sm:$0xff] }
 0x798   :  { %v1826_v54 = vmul.f32 %v2358_v58, %v1825_v11  ;;  %2221 = vmatpush.msra.mxu1 %v1237_v59  ;;  %v1922_v5 = vpop.f32.mrf.mxu3 }
 0x79a   :  { %v1827_v6 = vadd.f32 %v2358_v58, %v1826_v54  ;;  %2222 = vmatpush.msra.mxu1 %v1236_v17 }
 0x79c   :  { %v1831_v48 = vsel %vm1830_vm7, %v2358_v58, %v1827_v6  ;;  %2223 = vmatpush.msra.mxu1 %v1235_v0 }
 0x79d   :  { %v1836_v16 = vsel %vm1833_vm3, %v1835_v23, %v1831_v48 }
 0x79e   :  { %v1843_v30 = vmul.f32 %v1836_v16, %v3134_v47  ;;  %v1771_v47 = vsel %vm3227_vm10, %v3145_v55, %v1767_v38  ;;  %v1840_v55 = vmul.f32 %v1791_v4, %v3114_v2  ;;  %v1230_v2 = vld [vmem:[#allocation2 + $0x1a0] sm:$0xff] }
 0x79f   :  { %v1776_v57 = vsel %vm1773_vm8, %v1775_v46, %v1771_v47  ;;  %1888 = vmatpush.msrb.mxu0 %v1230_v2  ;;  %v2001_v47 = vld [vmem:[#allocation2 + $0x20] sm:$0xff] }
 0x7a0   :  { %1854 = vmatpush.msra.mxu2 %v1843_v30  ;;  %v1839_v58 = vmul.f32 %v1776_v57, %v3112_v52 }
 0x7a1   :  { %1987 = vmatpush.msra.mxu0 %v1238_v50 }
 0x7a2   :  { %1855 = vmatpush.msra.mxu2 %v1842_v60  ;;  %v1968_v60 = vperm.slane %v3019_v37, 5 }
 0x7a3   :  { %1988 = vmatpush.msra.mxu0 %v1237_v59 }
 0x7a4   :  { %1856 = vmatpush.msra.mxu2 %v1841_v41 }
 0x7a5   :  { %1989 = vmatpush.msra.mxu0 %v1236_v17 }
 0x7a6   :  { %1857 = vmatpush.msra.mxu2 %v1840_v55  ;;  %v2390_v55 = vld [vmem:[%s3281_s7] sm:$0xff] }
 0x7a7   :  { %1990 = vmatpush.msra.mxu0 %v1235_v0  ;;  %v2005_v35 = vperm.slane %v2390_v55, 1 }
 0x7a8   :  { %1858 = vmatpush.msra.mxu2 %v1839_v58 }
 0x7aa   :  { %1859 = vmatpush.msra.mxu2 %v1838_v25 }
 0x7ab   :  { %2204 = vmatmul.msk.f32.vlgmr.msra.gmra.mxu2 %vm1009_vm9, %v2388_v43 }
 0x7ac   :  { %2024 = vmatpush.msrb.mxu2 %v2004_v32 }
 0x7ae   :  { %2025 = vmatpush.msrb.mxu2 %v2003_v39 }
 0x7b0   :  { %2026 = vmatpush.msrb.mxu2 %v2002_v49 }
 0x7b2   :  { %2027 = vmatpush.msrb.mxu2 %v2001_v47 }
 0x7b3   :  { %2205 = vmatmul.msk.f32.gmra.mxu2 %vm1009_vm9, %v2389_v33 }
 0x82e   :  { %v1861_v52 = vpop.f32.mrf.mxu2 }
 0x82f   :  { %2206 = vmatmul.msk.f32.vlgmr.msrb.gmra.mxu0 %vm78_vm0, %v1861_v52 }
 0x836   :  { %v1864_v22 = vpop.f32.mrf.mxu2 }
 0x837   :  { %2207 = vmatmul.msk.f32.gmra.mxu0 %vm78_vm0, %v1864_v22 }
 0x8ac   :  { %v1890_v36 = vpop.f32.mrf.mxu0 }
 0x8ad   :  { %v1920_v63 = vadd.f32 %v1919_v19, %v1890_v36 }
 0x8af   :  { %v1926_v3 = vadd.f32 %v1925_v61, %v1920_v63 }
 0x8b1   :  { %v2210_v8 = vmul.f32 -1.442695, %v1926_v3 }
 0x8b3   :  { %2359 = vpow2.f32 %v2210_v8 }
 0x8b4   :  { %v1893_v11 = vpop.f32.mrf.mxu0 }
 0x8b5   :  { %v1923_v42 = vadd.f32 %v1922_v5, %v1893_v11 }
 0x8b7   :  { %v1927_v14 = vadd.f32 %v1925_v61, %v1923_v42 }
 0x8b9   :  { %v2360_v10 = vpop.eup %2359  ;;  %v2211_v54 = vmul.f32 -1.442695, %v1927_v14 }
 0x8ba   :  { %v1934_v24 = vadd.f32 1.0, %v2360_v10 }
 0x8bb   :  { %2361 = vpow2.f32 %v2211_v54 }
 0x8bc   :  { %2363 = vrcp.f32 %v1934_v24  ;;  %v1947_v27 = vand.u32 2147483648, %v1934_v24  ;;  %v1945_v38 = vand.u32 2147483647, %v1934_v24  ;;  %vm1941_vm11 = vweird.f32 %v1934_v24 }
 0x8be   :  { %v1948_v23 = vor.u32 1.1754944e-38, %v1947_v27  ;;  %vm1946_vm6 = vcmp.eq.f32.partialorder %v1945_v38, 8.507059e+37 }
 0x8c1   :  { %v2362_v26 = vpop.eup %2361 }
 0x8c2   :  { %v2364_v28 = vpop.eup %2363  ;;  %v1935_v34 = vadd.f32 1.0, %v2362_v26 }
 0x8c3   :  { %v1937_v56 = vmul.f32 %v2364_v28, %v1934_v24  ;;  %vm1942_vm9 = vweird.f32 %v2364_v28 }
 0x8c4   :  { %2365 = vrcp.f32 %v1935_v34  ;;  %vm1943_vm5 = vmor %vm1941_vm11, %vm1942_vm9  ;;  %v1962_v12 = vand.u32 2147483648, %v1935_v34  ;;  %v1960_v51 = vand.u32 2147483647, %v1935_v34  ;;  %vm1956_vm2 = vweird.f32 %v1935_v34 }
 0x8c5   :  { %v1938_v9 = vsub.f32 1.0, %v1937_v56 }
 0x8c6   :  { %v1963_v30 = vor.u32 1.1754944e-38, %v1962_v12  ;;  %vm1961_vm4 = vcmp.eq.f32.partialorder %v1960_v51, 8.507059e+37 }
 0x8c7   :  { %v1939_v6 = vmul.f32 %v2364_v28, %v1938_v9 }
 0x8c9   :  { %v1940_v20 = vadd.f32 %v2364_v28, %v1939_v6 }
 0x8ca   :  { %v2366_v40 = vpop.eup %2365 }
 0x8cb   :  { %v1944_v44 = vsel %vm1943_vm5, %v2364_v28, %v1940_v20  ;;  %v1952_v48 = vmul.f32 %v2366_v40, %v1935_v34  ;;  %vm1957_vm7 = vweird.f32 %v2366_v40 }
 0x8cc   :  { %v1949_v62 = vsel %vm1946_vm6, %v1948_v23, %v1944_v44  ;;  %vm1958_vm3 = vmor %vm1956_vm2, %vm1957_vm7 }
 0x8cd   :  { %v1966_v45 = vmul.f32 %v1949_v62, %v1926_v3  ;;  %v1953_v7 = vsub.f32 1.0, %v1952_v48 }
 0x8cf   :  { %v1954_v16 = vmul.f32 %v2366_v40, %v1953_v7  ;;  %2212 = vmatmul.msk.f32.vlgmr.msra.gmra.mxu0 %vm78_vm0, %v1966_v45 }
 0x8d1   :  { %v1955_v1 = vadd.f32 %v2366_v40, %v1954_v16 }
 0x8d3   :  { %v1959_v29 = vsel %vm1958_vm3, %v2366_v40, %v1955_v1 }
 0x8d4   :  { %v1964_v21 = vsel %vm1961_vm4, %v1963_v30, %v1959_v29 }
 0x8d5   :  { %v1967_v18 = vmul.f32 %v1964_v21, %v1927_v14 }
 0x8d7   :  { %2213 = vmatmul.msk.f32.vlgmr.msra.gmra.mxu1 %vm78_vm0, %v1967_v18 }
 0x94c   :  { %v1992_v46 = vpop.f32.mrf.mxu0 }
 0x94d   :  { %v1993_v4 = vadd.f32 %v1992_v46, %v1968_v60 }
 0x94f   :  { %v1998_v53 = vadd.f32 %v1993_v4, %v2985_v15 }
 0x951   :  { %2214 = vmatmul.msk.f32.vlgmr.msrb.gmra.mxu2 %vm78_vm0, %v1998_v53 }
 0x954   :  { %v1995_v41 = vpop.f32.mrf.mxu1 }
 0x955   :  { %v1996_v31 = vadd.f32 %v1995_v41, %v1968_v60 }
 0x957   :  { %v1999_v57 = vadd.f32 %v1996_v31, %v2982_v13 }
 0x959   :  { %2215 = vmatmul.msk.f32.gmra.mxu2 %vm78_vm0, %v1999_v57 }
 0x9d4   :  { %v2029_v58 = vpop.f32.mrf.mxu2 }
 0x9d5   :  { %v2030_v25 = vadd.f32 %v2029_v58, %v2005_v35 }
 0x9d7   :  { %2035 = vst.msk [vmem:[#allocation5] sm:$0xff] %vm78_vm0, %v2030_v25 }
 0x9dc   :  { %v2032_v15 = vpop.f32.mrf.mxu2 }
 0x9dd   :  { %v2033_v37 = vadd.f32 %v2032_v15, %v2005_v35 }
 0x9df   :  { %2036 = vst.msk [vmem:[#allocation5 + $0x8] sm:$0xff] %vm78_vm0, %v2033_v37 }
 0x9e0   :  { %2049 = dma.vmem_to_hbm [thread:$0]  %s2042_s5, 256, %s2044_s24, [#allocation4], %s2444_s10, %s2444_s10, %s2445_s11  }
 0x9e1   :  { %2441 = dma.done.wait [#allocation4], 256  }
 0x9e2   :  { %2442 = vsyncadd [#allocation4], 4294967040 }
 0x9e3   :  { %2054 = vsyncpa [#allocation3], 1 }
 0x9e4   :  { %2055 = vsyncpa [#allocation4], 1 }

</bundles_post_ra>
